<compile_context>
chip_gen: v5e
topology: v5e:2x2
jax: 0.10.0
libtpu: 0.0.40
codegen_flags: <defaults>
</compile_context>

<pallas_src>
import math
import jax
import jax.numpy as jnp
from jax.experimental import pallas as pl
from jax.experimental.pallas import tpu as pltpu

EPS = 1e-6


def _round_up(n, m):
    return ((n + m - 1) // m) * m


def _make_kernel(sublayer_fn, n_params, eps):
    """Fused pre-norm residual block body: out_tile = x_tile + sublayer(LN(x_tile))."""

    def kernel(*refs):
        x_ref, g_ref, bt_ref = refs[0], refs[1], refs[2]
        p_refs = refs[3:3 + n_params]
        o_ref = refs[3 + n_params]

        x = x_ref[...]                      # (TILE_N, D) f32 row tile
        d = x.shape[-1]

        # --- LayerNorm, PyTorch-module semantics: mean over last dim,
        #     unbiased std (divide by D-1), eps added to the *std* ---
        mean = jnp.mean(x, axis=-1, keepdims=True)
        xc = x - mean
        var = jnp.sum(xc * xc, axis=-1, keepdims=True) * (1.0 / (d - 1))
        std = jnp.sqrt(var)
        inv = pl.reciprocal(std + eps, approx=True)        # EUP, frees VPU slot
        normed = g_ref[...] * (xc * inv) + bt_ref[...]

        # --- sublayer traced inline -> single fused kernel launch per tile ---
        sub = sublayer_fn(normed, *(p[...] for p in p_refs))

        # TODO(synk): nn.Dropout(p) on the sublayer output is stochastic in
        # train mode; modeled as identity (eval-mode semantics).

        # --- residual: re-read x from VMEM right before the store so the x
        #     tile's vregs need not stay live across both matmuls ---
        o_ref[...] = x_ref[...] + sub.astype(o_ref.dtype)

    return kernel


def sublayer_connection(x, gamma, beta, sublayer_fn, sublayer_params, *,
                        eps=EPS, tile_n=256,
                        vmem_limit_bytes=48 * 1024 * 1024):
    """Fused pre-norm residual block: x + sublayer(LayerNorm(x)).

    x: [B, S, D]; gamma/beta: [1, D];
    sublayer_fn(y_2d, *param_values) -> [TILE_N, D] (applied per row tile).
    """
    B, S, D = x.shape
    N = B * S
    x2 = x.reshape(N, D)                   # lane-dense 2-D slab (free reshape)

    # Row tile: MXU-filling (256 rows on v6e/v7x) but a multiple of 8 and no
    # larger than the (padded) problem; pad N so every tile is full.
    tile_n = min(tile_n, _round_up(max(N, 8), 8))
    n_pad = pl.cdiv(N, tile_n) * tile_n
    if n_pad != N:
        x2 = jnp.pad(x2, ((0, n_pad - N), (0, 0)))
    grid = (n_pad // tile_n,)

    def resident(shape):
        # Constant index_map: parameter block stays VMEM-resident across tiles.
        return pl.BlockSpec(shape, lambda i, _n=len(shape): (0,) * _n)

    in_specs = [pl.BlockSpec((tile_n, D), lambda i: (i, 0)),
                resident(gamma.shape), resident(beta.shape)]
    in_specs += [resident(p.shape) for p in sublayer_params]

    out = pl.pallas_call(
        _make_kernel(sublayer_fn, len(sublayer_params), eps),
        out_shape=jax.ShapeDtypeStruct((n_pad, D), x.dtype),
        grid=grid,
        in_specs=in_specs,
        out_specs=pl.BlockSpec((tile_n, D), lambda i: (i, 0)),
        compiler_params=pltpu.CompilerParams(
            # Row tiles are independent -> shard across both TCs on v7x.
            dimension_semantics=("parallel",),
            vmem_limit_bytes=vmem_limit_bytes),
    )(x2, gamma, beta, *sublayer_params)

    if n_pad != N:
        out = out[:N]
    return out.reshape(B, S, D)


def ffn_sublayer(y, w1, b1, w2, b2):
    """Position-wise FFN: ReLU(y @ W1 + b1) @ W2 + b2  (weights stored [in, out]).

    Operands are cast to bf16 only at the MXU boundary (single-pass matmul on
    v6e/v7x) with f32 accumulation; bias add / ReLU stay f32 (v5e-safe).
    """
    h = jnp.dot(y.astype(jnp.bfloat16), w1.astype(jnp.bfloat16),
                preferred_element_type=jnp.float32) + b1.astype(jnp.float32)
    h = jnp.maximum(h, 0.0)
    out = jnp.dot(h.astype(jnp.bfloat16), w2.astype(jnp.bfloat16),
                  preferred_element_type=jnp.float32) + b2.astype(jnp.float32)
    return out


def _reference(x, gamma, beta, params, eps=EPS):
    """Pure-JAX f32 reference mirroring the PyTorch forward (eval-mode dropout)."""
    w1, b1, w2, b2 = params
    mean = jnp.mean(x, axis=-1, keepdims=True)
    std = jnp.std(x, axis=-1, keepdims=True, ddof=1)       # torch.std: unbiased
    normed = gamma * (x - mean) / (std + eps) + beta
    h = jnp.maximum(
        jnp.dot(normed, w1, precision=jax.lax.Precision.HIGHEST) + b1, 0.0)
    sub = jnp.dot(h, w2, precision=jax.lax.Precision.HIGHEST) + b2
    return x + sub


if __name__ == "__main__":
    # N = B*S = 512 rows -> two 256-row tiles (exercises the streamed pipeline
    # and the parallel row axis); D = 128 keeps activations lane-dense.
    B, S, D, D_FF = 4, 128, 128, 256
    key = jax.random.PRNGKey(0)
    k = jax.random.split(key, 8)

    x = jax.random.normal(k[0], (B, S, D), jnp.float32)

    # LayerNorm affine params, perturbed from ones/zeros so the affine path
    # is actually exercised.
    gamma = 1.0 + 0.1 * jax.random.normal(k[1], (1, D), jnp.float32)
    beta = 0.1 * jax.random.normal(k[2], (1, D), jnp.float32)

    # Position-wise FFN params, stored [in, out] (y @ W + b), PyTorch
    # nn.Linear default uniform init range.
    bound1 = 1.0 / math.sqrt(D)
    w1 = jax.random.uniform(k[3], (D, D_FF), jnp.float32, -bound1, bound1)
    b1 = jax.random.uniform(k[4], (1, D_FF), jnp.float32, -bound1, bound1)
    bound2 = 1.0 / math.sqrt(D_FF)
    w2 = jax.random.uniform(k[5], (D_FF, D), jnp.float32, -bound2, bound2)
    b2 = jax.random.uniform(k[6], (1, D), jnp.float32, -bound2, bound2)

    # Weights stored bf16 (operands are bf16 at the MXU anyway; halves the
    # resident-weight VMEM footprint for v7x).  Biases stay f32.
    params_kernel = (w1.astype(jnp.bfloat16), b1, w2.astype(jnp.bfloat16), b2)

    out = sublayer_connection(x, gamma, beta, ffn_sublayer, params_kernel)
    out = jax.block_until_ready(out)

    ref = _reference(x, gamma, beta, (w1, b1, w2, b2))
    assert out.shape == (B, S, D)
    max_err = float(jnp.max(jnp.abs(out - ref)))
    # Tolerance loosened (vs f32 reference) for bf16 MXU operands + approx
    # reciprocal, per the perf review.
    assert jnp.allclose(out, ref, rtol=5e-2, atol=5e-2), max_err

    print("KERNEL_OK")
</pallas_src>

<mosaic_0001>
module attributes {stable_mosaic.version = 11 : i64} {
  func.func @kernel(%arg0: i32, %arg1: memref<256x128xf32, #tpu.memory_space<vmem>>, %arg2: memref<1x128xf32, #tpu.memory_space<vmem>>, %arg3: memref<1x128xf32, #tpu.memory_space<vmem>>, %arg4: memref<128x256xbf16, #tpu.memory_space<vmem>>, %arg5: memref<1x256xf32, #tpu.memory_space<vmem>>, %arg6: memref<256x128xbf16, #tpu.memory_space<vmem>>, %arg7: memref<1x128xf32, #tpu.memory_space<vmem>>, %arg8: memref<256x128xf32, #tpu.memory_space<vmem>>) attributes {dimension_semantics = [#tpu.dimension_semantics<parallel>], iteration_bounds = array<i64: 2>, scalar_prefetch = 0 : i64, scratch_operands = 0 : i64, tpu.core_type = #tpu.core_type<tc>, window_params = [{transform_indices = @transform_0, window_bounds = array<i64: 256, 128>}, {pipeline_mode = #tpu.pipeline_mode<synchronous>, transform_indices = @transform_1, window_bounds = array<i64: 1, 128>}, {pipeline_mode = #tpu.pipeline_mode<synchronous>, transform_indices = @transform_2, window_bounds = array<i64: 1, 128>}, {pipeline_mode = #tpu.pipeline_mode<synchronous>, transform_indices = @transform_3, window_bounds = array<i64: 128, 256>}, {pipeline_mode = #tpu.pipeline_mode<synchronous>, transform_indices = @transform_4, window_bounds = array<i64: 1, 256>}, {pipeline_mode = #tpu.pipeline_mode<synchronous>, transform_indices = @transform_5, window_bounds = array<i64: 256, 128>}, {pipeline_mode = #tpu.pipeline_mode<synchronous>, transform_indices = @transform_6, window_bounds = array<i64: 1, 128>}, {transform_indices = @transform_7, window_bounds = array<i64: 256, 128>}]} {
    %c0 = arith.constant 0 : index
    %c0_0 = arith.constant 0 : index
    %0 = vector.load %arg1[%c0, %c0_0] : memref<256x128xf32, #tpu.memory_space<vmem>>, vector<256x128xf32>
    %cst = arith.constant dense<0.000000e+00> : vector<256xf32>
    %1 = vector.multi_reduction <add>, %0, %cst [1] : vector<256x128xf32> to vector<256xf32>
    %2 = vector.shape_cast %1 : vector<256xf32> to vector<256x1xf32>
    %cst_1 = arith.constant 1.280000e+02 : f32
    %3 = vector.broadcast %cst_1 : f32 to vector<256x1xf32>
    %4 = arith.divf %2, %3 : vector<256x1xf32>
    %5 = vector.broadcast %4 : vector<256x1xf32> to vector<256x128xf32>
    %6 = arith.subf %0, %5 : vector<256x128xf32>
    %7 = arith.mulf %6, %6 : vector<256x128xf32>
    %cst_2 = arith.constant dense<0.000000e+00> : vector<256xf32>
    %8 = vector.multi_reduction <add>, %7, %cst_2 [1] : vector<256x128xf32> to vector<256xf32>
    %9 = vector.shape_cast %8 : vector<256xf32> to vector<256x1xf32>
    %cst_3 = arith.constant 0.00787401571 : f32
    %10 = vector.broadcast %cst_3 : f32 to vector<256x1xf32>
    %11 = arith.mulf %9, %10 : vector<256x1xf32>
    %12 = math.sqrt %11 : vector<256x1xf32>
    %cst_4 = arith.constant 9.99999997E-7 : f32
    %13 = vector.broadcast %cst_4 : f32 to vector<256x1xf32>
    %14 = arith.addf %12, %13 : vector<256x1xf32>
    %15 = tpu.reciprocal %14 {approx = true} : vector<256x1xf32> -> vector<256x1xf32>
    %c0_5 = arith.constant 0 : index
    %c0_6 = arith.constant 0 : index
    %16 = vector.load %arg2[%c0_5, %c0_6] : memref<1x128xf32, #tpu.memory_space<vmem>>, vector<1x128xf32>
    %17 = vector.broadcast %15 : vector<256x1xf32> to vector<256x128xf32>
    %18 = arith.mulf %6, %17 : vector<256x128xf32>
    %19 = vector.broadcast %16 : vector<1x128xf32> to vector<256x128xf32>
    %20 = arith.mulf %19, %18 : vector<256x128xf32>
    %c0_7 = arith.constant 0 : index
    %c0_8 = arith.constant 0 : index
    %21 = vector.load %arg3[%c0_7, %c0_8] : memref<1x128xf32, #tpu.memory_space<vmem>>, vector<1x128xf32>
    %22 = vector.broadcast %21 : vector<1x128xf32> to vector<256x128xf32>
    %23 = arith.addf %20, %22 : vector<256x128xf32>
    %c0_9 = arith.constant 0 : index
    %c0_10 = arith.constant 0 : index
    %24 = vector.load %arg4[%c0_9, %c0_10] : memref<128x256xbf16, #tpu.memory_space<vmem>>, vector<128x256xbf16>
    %c0_11 = arith.constant 0 : index
    %c0_12 = arith.constant 0 : index
    %25 = vector.load %arg5[%c0_11, %c0_12] : memref<1x256xf32, #tpu.memory_space<vmem>>, vector<1x256xf32>
    %c0_13 = arith.constant 0 : index
    %c0_14 = arith.constant 0 : index
    %26 = vector.load %arg6[%c0_13, %c0_14] : memref<256x128xbf16, #tpu.memory_space<vmem>>, vector<256x128xbf16>
    %c0_15 = arith.constant 0 : index
    %c0_16 = arith.constant 0 : index
    %27 = vector.load %arg7[%c0_15, %c0_16] : memref<1x128xf32, #tpu.memory_space<vmem>>, vector<1x128xf32>
    %28 = arith.truncf %23 : vector<256x128xf32> to vector<256x128xbf16>
    %cst_17 = arith.constant dense<0.000000e+00> : vector<256x256xf32>
    %29 = tpu.matmul %28, %24, %cst_17 {dimension_numbers = #tpu.dot_dimension_numbers<[1], [0], [0], [1], [0, 0, 1, 1], [], []>} : vector<256x128xbf16>, vector<128x256xbf16>, vector<256x256xf32> -> vector<256x256xf32>
    %30 = vector.broadcast %25 : vector<1x256xf32> to vector<256x256xf32>
    %31 = arith.addf %29, %30 : vector<256x256xf32>
    %cst_18 = arith.constant 0.000000e+00 : f32
    %32 = vector.broadcast %cst_18 : f32 to vector<256x256xf32>
    %33 = arith.maximumf %31, %32 : vector<256x256xf32>
    %34 = arith.truncf %33 : vector<256x256xf32> to vector<256x256xbf16>
    %cst_19 = arith.constant dense<0.000000e+00> : vector<256x128xf32>
    %35 = tpu.matmul %34, %26, %cst_19 {dimension_numbers = #tpu.dot_dimension_numbers<[1], [0], [0], [1], [0, 0, 1, 1], [], []>} : vector<256x256xbf16>, vector<256x128xbf16>, vector<256x128xf32> -> vector<256x128xf32>
    %36 = vector.broadcast %27 : vector<1x128xf32> to vector<256x128xf32>
    %37 = arith.addf %35, %36 : vector<256x128xf32>
    %c0_20 = arith.constant 0 : index
    %c0_21 = arith.constant 0 : index
    %38 = vector.load %arg1[%c0_20, %c0_21] : memref<256x128xf32, #tpu.memory_space<vmem>>, vector<256x128xf32>
    %39 = arith.addf %38, %37 : vector<256x128xf32>
    %c0_22 = arith.constant 0 : index
    %c0_23 = arith.constant 0 : index
    %40 = vector.load %arg8[%c0_22, %c0_23] : memref<256x128xf32, #tpu.memory_space<vmem>>, vector<256x128xf32>
    tpu.vector_store %arg8[%c0_22, %c0_23], %39 {strides = array<i32>} : memref<256x128xf32, #tpu.memory_space<vmem>>, vector<256x128xf32>,
    return
  }
  func.func @transform_0(%arg0: i32) -> (i32, i32) {
    %c0_i32 = arith.constant 0 : i32
    %c0_i32_0 = arith.constant 0 : i32
    return %arg0, %c0_i32 : i32, i32
  }
  func.func @transform_1(%arg0: i32) -> (i32, i32) {
    %c0_i32 = arith.constant 0 : i32
    %c0_i32_0 = arith.constant 0 : i32
    %c0_i32_1 = arith.constant 0 : i32
    return %c0_i32, %c0_i32_0 : i32, i32
  }
  func.func @transform_2(%arg0: i32) -> (i32, i32) {
    %c0_i32 = arith.constant 0 : i32
    %c0_i32_0 = arith.constant 0 : i32
    %c0_i32_1 = arith.constant 0 : i32
    return %c0_i32, %c0_i32_0 : i32, i32
  }
  func.func @transform_3(%arg0: i32) -> (i32, i32) {
    %c0_i32 = arith.constant 0 : i32
    %c0_i32_0 = arith.constant 0 : i32
    %c0_i32_1 = arith.constant 0 : i32
    return %c0_i32, %c0_i32_0 : i32, i32
  }
  func.func @transform_4(%arg0: i32) -> (i32, i32) {
    %c0_i32 = arith.constant 0 : i32
    %c0_i32_0 = arith.constant 0 : i32
    %c0_i32_1 = arith.constant 0 : i32
    return %c0_i32, %c0_i32_0 : i32, i32
  }
  func.func @transform_5(%arg0: i32) -> (i32, i32) {
    %c0_i32 = arith.constant 0 : i32
    %c0_i32_0 = arith.constant 0 : i32
    %c0_i32_1 = arith.constant 0 : i32
    return %c0_i32, %c0_i32_0 : i32, i32
  }
  func.func @transform_6(%arg0: i32) -> (i32, i32) {
    %c0_i32 = arith.constant 0 : i32
    %c0_i32_0 = arith.constant 0 : i32
    %c0_i32_1 = arith.constant 0 : i32
    return %c0_i32, %c0_i32_0 : i32, i32
  }
  func.func @transform_7(%arg0: i32) -> (i32, i32) {
    %c0_i32 = arith.constant 0 : i32
    %c0_i32_0 = arith.constant 0 : i32
    return %arg0, %c0_i32 : i32, i32
  }
}

</mosaic_0001>

<bundles_post_ra>
// kernel: tpu_custom_call.1
= control target key start
LH: loop header
LB: loop body
LE: loop exit
PB: predicated region body
PF: predicated region fallthrough
CT: control target
= control target key end

     0   :  { %s3799_s0 = inlined_call_operand.hbm [shape: f32[512,128], index: 0, kind: input, shape index: {}]   ;;  %s3800_s1 = inlined_call_operand.hbm [shape: f32[1,128], index: 1, kind: input, shape index: {}]   ;;  %s3801_s2 = inlined_call_operand.vmem [shape: f32[1,128], index: 2, kind: input, shape index: {}]   ;;  %s3802_s3 = inlined_call_operand.hbm [shape: bf16[128,256], index: 3, kind: input, shape index: {}]   ;;  %s3803_s4 = inlined_call_operand.vmem [shape: f32[1,256], index: 4, kind: input, shape index: {}]   ;;  %s3804_s5 = inlined_call_operand.hbm [shape: bf16[256,128], index: 5, kind: input, shape index: {}]   ;;  %s3805_s6 = inlined_call_operand.vmem [shape: f32[1,128], index: 6, kind: input, shape index: {}]   ;;  %s3806_s7 = inlined_call_operand.hbm [shape: f32[512,128], index: 7, kind: output, shape index: {}]  }
   0x1   :  { %3809 = sst [smem:[#allocation15_spill]] %s3800_s1 }
   0x2   :  { %12 = vsyncpa [#allocation3], 0 }
   0x3   :  { %14 = vsyncpa [#allocation3 + $0x1], 0 }
   0x4   :  { %15 = vsyncpa [#allocation6], 0 }
   0x5   :  { %16 = vsyncpa [#allocation9], 0 }
   0x6   :  { %17 = vsyncpa [#allocation4], 0 }
   0x7   :  { %19 = vsyncpa [#allocation4 + $0x1], 0  ;;  %s2760_s24 = smov 0   ;;  %s2762_s25 = smov 0  }
   0x8   :  { %s2764_s26 = smov 0   ;;  %s2766_s27 = smov 0  }
   0x9 LB: > { %s2781_s28 = sadd.s32 4294967295, %s2708_s27   ;;  %s2080_s29 = sadd.s32 4294967294, %s2708_s27   ;;  %s2708_s27 = sphi %s2766_s27, %s3823_s27   ;;  %s2704_s26 = sphi %s2764_s26, %s3822_s26   ;;  %s2700_s25 = sphi %s2762_s25, %s3821_s25   ;;  %s2696_s24 = sphi %s2760_s24, %s3820_s24  }
   0xa   : > { %p45_p0 = scmp.ne.s32.totalorder %s2700_s25, %s2696_s24  ;;  %p46_p1 = scmp.eq.s32.totalorder %s2781_s28, 0 }
   0xb   : > { %p195_p2 = scmp.eq.s32.totalorder %s2781_s28, 1  ;;  %p201_p3 = scmp.eq.s32.totalorder %s2080_s29, 1 }
   0xc   : > { %p2790_p4 = por %p46_p1, %p45_p0  ;;  %p2081_p5 = scmp.ge.s32.totalorder %s2708_s27, 1 }
   0xd   : > { %p2795_p6 = por %p201_p3, %p45_p0  ;;  %p208_p7 = scmp.lt.s32.totalorder %s2708_s27, 3 }
   0xe   : > { %s3812_s1 = sld [smem:[#allocation15_spill]]  ;;  %s2710_s13 = smov [#allocation5]  }
   0xf   : > { %p2803_p8 = pnand %p2081_p5, %p208_p7  ;;  %s222_s14 = sshll.u32 %s2710_s13, 4  ;;  %s223_s14 = int_to_ptr.vmem [resolvable:$true] %s222_s14 }
  0x10   : > { %s234_s17 = sshll.u32 %s3802_s3, 4  ;;  %s2711_s19 = smov [#allocation7]   ;;  %s235_s17 = int_to_ptr.hbm [resolvable:$true] %s234_s17 }
  0x11   : > { %p2278_p10 = pneg %p2803_p8  ;;  %s236_s20 = sshll.u32 %s2711_s19, 4  ;;  %s237_s20 = int_to_ptr.vmem [resolvable:$true] %s236_s20 }
  0x12   : > { %s3807_s21 = smov 128   ;;  %s3808_s22 = smov 8  }
  0x13   : > { %p2815_p11 = pnand %p2278_p10, %p46_p1  ;;  %s251_s9 = sshll.u32 %s3804_s5, 4  ;;  %s252_s9 = int_to_ptr.hbm [resolvable:$true] %s251_s9 }
  0x14   : > { %s220_s11 = sshll.u32 %s3812_s1, 4  ;;  %s2714_s10 = smov [#allocation8]   ;;  %s221_s11 = int_to_ptr.hbm [resolvable:$true] %s220_s11 }
  0x15   : > { %2281 = dma.hbm_to_vmem [thread:$0]  (!%p2815_p11), %s221_s11, 16, %s223_s14, [#allocation6]  }
  0x16   : > { %2284 = dma.hbm_to_vmem [thread:$0]  (!%p2815_p11), %s235_s17, 2048, %s237_s20, [#allocation6], %s3807_s21, %s3807_s21, %s3808_s22  }
  0x17   : > { %s253_s11 = sshll.u32 %s2714_s10, 4  ;;  %s2715_s13 = smov 64   ;;  %s254_s11 = int_to_ptr.vmem [resolvable:$true] %s253_s11 }
  0x18   : > { %s2716_s14 = smov 4   ;;  %s2832_s15 = sadd.s32 1, %s2708_s27  }
  0x19   : > { %2287 = dma.hbm_to_vmem [thread:$0]  (!%p2815_p11), %s252_s9, 2048, %s254_s11, [#allocation9], %s2715_s13, %s2715_s13, %s2716_s14  }
  0x1a   : > { %s29_s16 = ssub.s32 %s2708_s27, %s2832_s15  ;;  %s32_s17 = sadd.s32 1, %s2704_s26 }
  0x1b   : > { %p30_p12 = scmp.eq.s32.totalorder %s29_s16, 0  ;;  %p39_p13 = scmp.ne.s32.totalorder %s2704_s26, %s2700_s25 }
  0x1c   : > { %p40_p0 = scmp.eq.s32.totalorder %s2708_s27, 0  ;;  %p2299_p5 = scmp.lt.s32.totalorder %s2708_s27, 2 }
  0x1d   : > { %s2841_s19 = scalar_select %p30_p12, %s2704_s26, %s32_s17  }
  0x1e   : > { %p2845_p3 = por %p195_p2, %p39_p13  ;;  %s270_s23 = sand.u32 1, %s2704_s26  }
  0x1f   : > { %s2228_s29 = sshll.u32 %s2708_s27, 8  ;;  %p41_p7 = por %p40_p0, %p39_p13 }
  0x20   : > { %s2086_s18 = sshll.u32 %s270_s23, 8  ;;  %s279_s11 = scalar_lea.hbm %s3799_s0, %s2228_s29 }
  0x21   : > { %s280_s13 = sshll.u32 %s279_s11, 4  ;;  %s274_s14 = scalar_lea.vmem [#allocation2], %s2086_s18  ;;  %s281_s13 = int_to_ptr.hbm [resolvable:$true] %s280_s13 }
  0x22   : > { %s282_s16 = sshll.u32 %s274_s14, 4  ;;  %p2855_p10 = pnand %p2299_p5, %p41_p7  ;;  %s283_s16 = int_to_ptr.vmem [resolvable:$true] %s282_s16 }
  0x23   : > { %s271_s21 = scalar_lea.sflag [#allocation3], %s270_s23  ;;  %s2604_s22 = sshra.s32 %s281_s13, 4  ;;  %s2605_s22 = int_to_ptr.hbm [resolvable:$true] %s2604_s22 }
  0x24   : > { %s2606_s1 = scalar_lea.hbm %s2605_s22, 256  ;;  %p2608_p11 = pneg %p2855_p10 }
  0x25   : > { %p2607_p2 = scmp.ne.s32.totalorder %s2605_s22, %s2606_s1  ;;  %s2611_s18 = scalar_lea.hbm %s3799_s0, 512 }
  0x26   : > { %p2612_p0 = scmp.lt.s32.totalorder %s2605_s22, %s3799_s0  ;;  %p2613_p5 = scmp.lt.s32.totalorder %s2611_s18, %s2606_s1 }
  0x27   : > { %p2609_p12 = pnand %p2608_p11, %p2607_p2 }
  0x28   : > { %p2614_p7 = por %p2613_p5, %p2612_p0 }
  0x29   : > { %p2610_p13 = pneg %p2609_p12 }
  0x2b   : > { %p2615_p9 = pnand %p2614_p7, %p2610_p13 }
  0x2d   : > { %2618 = shalt.err (!%p2615_p9)
}
  0x2e   : > { %s3817_s23 = smov 8   ;;  %s3818_s14 = smov 128  }
  0x2f   : > { %2291 = dma.hbm_to_vmem [thread:$0]  (!%p2855_p10), %s281_s13, 4096, %s283_s16, %s271_s21, %s3818_s14, %s3818_s14, %s3817_s23  }
  0x30   : > { %294 = sbr.rel (%p2803_p8) target bundleno = 1171 (0x493), region = 48  ;;  %s2875_s29 = sand.u32 (!%p2803_p8), 1, %s2700_s25  }
  0x31   : > { %s2090_s1 = sshll.u32 (!%p2803_p8), %s2875_s29, 8  ;;  %s297_s22 = scalar_lea.sflag (!%p2803_p8), [#allocation3], %s2875_s29 }
  0x32   : > { %s2881_s9 = scalar_lea.vmem (!%p2803_p8), [#allocation2], %s2090_s1 }
  0x35   : > { %2679 = dma.done.wait (%p2790_p4), %s297_s22, 4096  }
  0x36   : > { %2681 = vsyncadd (%p2790_p4), %s297_s22, 4294963200 }
  0x37   : > { %2683 = dma.done.wait (%p46_p1), [#allocation6], 2064  }
  0x38   : > { %2685 = vsyncadd (%p46_p1), [#allocation6], 4294965232 }
  0x39   : > { %2687 = dma.done.wait (%p46_p1), [#allocation9], 2048  }
  0x3a   : > { %2689 = vsyncadd (%p46_p1), [#allocation9], 4294965248  ;;  %v351_v0 = vld [vmem:[%s2881_s9 + $0x10] sm:$0xff]  ;;  %v349_v1 = vld [vmem:[%s2881_s9] sm:$0xff]  ;;  %v2717_v7 = vmov 128.0   ;;  %s3507_s11 = scalar_lea.vmem [#allocation10], %s2090_s1 }
  0x3b   : > { %385 = vadd.xlane.f32.xlu1 %v351_v0  ;;  %381 = vadd.xlane.f32.xlu0 %v349_v1  ;;  %v353_v2 = vld [vmem:[%s2881_s9 + $0x20] sm:$0xff]  ;;  %v352_v3 = vld [vmem:[%s2881_s9 + $0x18] sm:$0xff]  ;;  %v350_v4 = vld [vmem:[%s2881_s9 + $0x8] sm:$0xff]  ;;  %2349 = vrcp.f32 %v2717_v7  ;;  %s2261_s1 = sshll.u32 %s2781_s28, 8  ;;  %s1975_s21 = sshll.u32 %s3507_s11, 4  ;;  %s1976_s21 = int_to_ptr.vmem [resolvable:$true] %s1975_s21 }
  0x3c   : > { %389 = vadd.xlane.f32.xlu2 %v353_v2  ;;  %v354_v5 = vld [vmem:[%s2881_s9 + $0x28] sm:$0xff]  ;;  %v355_v6 = vld [vmem:[%s2881_s9 + $0x30] sm:$0xff]  ;;  %v2918_v28 = vld [vmem:[%s2881_s9 + $0x38] sm:$0xff]  ;;  %s1974_s12 = scalar_lea.hbm %s3806_s7, %s2261_s1  ;;  %s1963_s28 = scalar_lea.sflag [#allocation4], %s2875_s29 }
  0x3d   : > { %v2933_v36 = vld [vmem:[%s2881_s9 + $0x40] sm:$0xff]  ;;  %v2944_v42 = vld [vmem:[%s2881_s9 + $0x58] sm:$0xff]  ;;  %v2947_v43 = vld [vmem:[%s2881_s9 + $0x48] sm:$0xff]  ;;  %s1977_s13 = sshll.u32 %s1974_s12, 4  ;;  %s2654_s23 = scalar_lea.hbm %s3806_s7, 512  ;;  %s1978_s13 = int_to_ptr.hbm [resolvable:$true] %s1977_s13 }
  0x3e   : > { %v2956_v46 = vld [vmem:[%s2881_s9 + $0x60] sm:$0xff]  ;;  %v2959_v47 = vld [vmem:[%s2881_s9 + $0x50] sm:$0xff]  ;;  %v2964_v48 = vld [vmem:[%s2881_s9 + $0x68] sm:$0xff]  ;;  %s2648_s16 = sshra.s32 %s1978_s13, 4  ;;  %s2649_s16 = int_to_ptr.hbm [resolvable:$true] %s2648_s16 }
  0x3f   : > { %v2968_v49 = vld [vmem:[%s2881_s9 + $0x70] sm:$0xff]  ;;  %v2244_v51 = vld [vmem:[#allocation7 + $0x74] sm:$0xf0]  ;;  %v2155_v54 = vld [vmem:[#allocation7 + $0x78] sm:$0xf0]  ;;  %s2650_s17 = scalar_lea.hbm %s2649_s16, 256  ;;  %p2655_p9 = scmp.lt.s32.totalorder %s2649_s16, %s3806_s7 }
  0x40   : > { %v2153_v50 = vld [vmem:[#allocation7 + $0x70] sm:$0xf]  ;;  %v2243_v52 = vld [vmem:[#allocation7 + $0x74] sm:$0xf]  ;;  %v2145_v56 = vld [vmem:[#allocation7 + $0x60] sm:$0xf]  ;;  %p2651_p1 = scmp.ne.s32.totalorder %s2649_s16, %s2650_s17  ;;  %p2656_p10 = scmp.lt.s32.totalorder %s2654_s23, %s2650_s17 }
  0x41   : > { %v2350_v8 = vpop.eup %2349  ;;  %v2154_v53 = vor.u32 %v2244_v51, %v2153_v50  ;;  %v2158_v55 = vor.u32 %v2243_v52, %v2155_v54  ;;  %v2242_v57 = vld [vmem:[#allocation7 + $0x64] sm:$0xf0]  ;;  %v2241_v58 = vld [vmem:[#allocation7 + $0x64] sm:$0xf]  ;;  %v2147_v60 = vld [vmem:[#allocation7 + $0x68] sm:$0xf0] }
  0x42   : > { %v446_v9 = vmul.f32 128.0, %v2350_v8  ;;  %vm450_vm0 = vweird.f32 %v2350_v8  ;;  %v2146_v59 = vor.u32 %v2242_v57, %v2145_v56  ;;  %v2150_v61 = vor.u32 %v2241_v58, %v2147_v60  ;;  %v2137_v62 = vld [vmem:[#allocation7 + $0x50] sm:$0xf]  ;;  %v2240_v63 = vld [vmem:[#allocation7 + $0x54] sm:$0xf0]  ;;  %p2652_p4 = pnand %p2651_p1, %p2845_p3  ;;  %p2657_p2 = por %p2656_p10, %p2655_p9 }
  0x43   : > { %387 = vadd.xlane.f32.xlu1 %v352_v3  ;;  %383 = vadd.xlane.f32.xlu0 %v350_v4  ;;  %v2107_v50 = vld [vmem:[#allocation7 + $0x18] sm:$0xf0]  ;;  %v2230_v56 = vld [vmem:[#allocation7 + $0x4] sm:$0xf0]  ;;  %v2229_v57 = vld [vmem:[#allocation7 + $0x4] sm:$0xf] }
  0x44   : > { %391 = vadd.xlane.f32.xlu2 %v354_v5  ;;  %v447_v10 = vsub.f32 1.0, %v446_v9  ;;  %1347 = vmatpush.bf16.msra.mxu0 %v2154_v53  ;;  %p2653_p8 = pneg %p2652_p4 }
  0x45   : > { %1436 = vmatpush.bf16.msra.mxu1 %v2158_v55  ;;  %v2097_v55 = vld [vmem:[#allocation7] sm:$0xf] }
  0x46   : > { %v448_v11 = vmul.f32 %v2350_v8, %v447_v10  ;;  %v2098_v58 = vor.u32 %v2230_v56, %v2097_v55  ;;  %v3023_v55 = vld [vmem:[%s2881_s9 + $0x78] sm:$0xff]  ;;  %p2658_p11 = pnand %p2657_p2, %p2653_p8 }
  0x48   : > { %v449_v12 = vadd.f32 %v2350_v8, %v448_v11  ;;  %1348 = vmatpush.bf16.msra.mxu0 %v2146_v59  ;;  %v2121_v11 = vld [vmem:[#allocation7 + $0x30] sm:$0xf]  ;;  %v2099_v59 = vld [vmem:[#allocation7 + $0x8] sm:$0xf0] }
  0x49   : > { %1437 = vmatpush.bf16.msra.mxu1 %v2150_v61 }
  0x4a   : > { %v2902_v13 = vsel %vm450_vm0, %v2350_v8, %v449_v12  ;;  %v2131_v8 = vld [vmem:[#allocation7 + $0x48] sm:$0xf0]  ;;  %v2236_v12 = vld [vmem:[#allocation7 + $0x34] sm:$0xf0] }
  0x4c   : > { %393 = vadd.xlane.f32.xlu2 %v355_v6 }
  0xae   : > { %v386_v14 = vpop.xlane.xlu1 %385  ;;  %v382_v15 = vpop.xlane.xlu0 %381 }
  0xaf   : > { %v452_v16 = vmul.f32 %v2902_v13, %v382_v15  ;;  %v390_v18 = vpop.xlane.xlu2 %389  ;;  %v454_v27 = vmul.f32 %v2902_v13, %v386_v14  ;;  %v2235_v14 = vld [vmem:[#allocation7 + $0x34] sm:$0xf] }
  0xb0   : > { %v456_v26 = vmul.f32 %v2902_v13, %v390_v18  ;;  %v2123_v18 = vld [vmem:[#allocation7 + $0x38] sm:$0xf0] }
  0xb1   : > { %v2905_v17 = vsub.f32 %v349_v1, %v452_v16  ;;  %v2927_v33 = vsub.f32 %v351_v0, %v454_v27  ;;  %v2239_v0 = vld [vmem:[#allocation7 + $0x54] sm:$0xf]  ;;  %v2138_v1 = vor.u32 %v2240_v63, %v2137_v62  ;;  %v2122_v16 = vor.u32 %v2236_v12, %v2121_v11 }
  0xb2   : > { %v2925_v32 = vsub.f32 %v353_v2, %v456_v26  ;;  %v2139_v2 = vld [vmem:[#allocation7 + $0x58] sm:$0xf0]  ;;  %v2115_v26 = vld [vmem:[#allocation7 + $0x28] sm:$0xf0]  ;;  %v2102_v62 = vor.u32 %v2229_v57, %v2099_v59 }
  0xb3   : > { %v516_v19 = vmul.f32 %v2905_v17, %v2905_v17  ;;  %v518_v37 = vmul.f32 %v2927_v33, %v2927_v33  ;;  %1349 = vmatpush.bf16.msra.mxu0 %v2138_v1 }
  0xb4   : > { %v520_v34 = vmul.f32 %v2925_v32, %v2925_v32 }
  0xb5   : > { %548 = vadd.xlane.f32.xlu0 %v516_v19  ;;  %v2126_v19 = vor.u32 %v2235_v14, %v2123_v18 }
  0xb6   : > { %v388_v20 = vpop.xlane.xlu1 %387  ;;  %v384_v21 = vpop.xlane.xlu0 %383 }
  0xb7   : > { %v455_v22 = vmul.f32 %v2902_v13, %v388_v20  ;;  %v453_v23 = vmul.f32 %v2902_v13, %v384_v21  ;;  %v392_v31 = vpop.xlane.xlu2 %391  ;;  %v2113_v20 = vld [vmem:[#allocation7 + $0x20] sm:$0xf]  ;;  %v2234_v21 = vld [vmem:[#allocation7 + $0x24] sm:$0xf0] }
  0xb8   : > { %v457_v35 = vmul.f32 %v2902_v13, %v392_v31  ;;  %v2105_v31 = vld [vmem:[#allocation7 + $0x10] sm:$0xf] }
  0xb9   : > { %v2911_v24 = vsub.f32 %v352_v3, %v455_v22  ;;  %v2913_v25 = vsub.f32 %v350_v4, %v453_v23  ;;  %v2142_v3 = vor.u32 %v2239_v0, %v2139_v2  ;;  %v2129_v4 = vld [vmem:[#allocation7 + $0x40] sm:$0xf]  ;;  %v2233_v22 = vld [vmem:[#allocation7 + $0x24] sm:$0xf]  ;;  %v2114_v23 = vor.u32 %v2234_v21, %v2113_v20 }
  0xba   : > { %v2938_v38 = vsub.f32 %v354_v5, %v457_v35  ;;  %v2238_v5 = vld [vmem:[#allocation7 + $0x44] sm:$0xf0]  ;;  %v2118_v27 = vor.u32 %v2233_v22, %v2115_v26  ;;  %v2231_v35 = vld [vmem:[#allocation7 + $0x14] sm:$0xf] }
  0xbb   : > { %v519_v29 = vmul.f32 %v2911_v24, %v2911_v24  ;;  %v517_v30 = vmul.f32 %v2913_v25, %v2913_v25  ;;  %1438 = vmatpush.bf16.msra.mxu1 %v2142_v3  ;;  %v2130_v7 = vor.u32 %v2238_v5, %v2129_v4  ;;  %v2110_v53 = vor.u32 %v2231_v35, %v2107_v50 }
  0xbc   : > { %v521_v40 = vmul.f32 %v2938_v38, %v2938_v38 }
  0xbd   : > { %554 = vadd.xlane.f32.xlu2 %v519_v29  ;;  %395 = vadd.xlane.f32.xlu0 %v2918_v28 }
  0xbe   : > { %550 = vadd.xlane.f32.xlu1 %v517_v30  ;;  %1350 = vmatpush.bf16.msra.mxu0 %v2130_v7 }
  0xbf   : > { %v394_v39 = vpop.xlane.xlu2 %393 }
  0xc0   : > { %v458_v41 = vmul.f32 %v2902_v13, %v394_v39 }
  0xc2   : > { %v2950_v44 = vsub.f32 %v355_v6, %v458_v41  ;;  %v2237_v6 = vld [vmem:[#allocation7 + $0x44] sm:$0xf]  ;;  %1351 = vmatpush.bf16.msra.mxu0 %v2122_v16 }
  0xc3   : > { %v2134_v9 = vor.u32 %v2237_v6, %v2131_v8 }
  0xc4   : > { %v522_v45 = vmul.f32 %v2950_v44, %v2950_v44 }
  0xc5   : > { %556 = vadd.xlane.f32.xlu2 %v520_v34  ;;  %397 = vadd.xlane.f32.xlu0 %v2933_v36  ;;  %v2232_v34 = vld [vmem:[#allocation7 + $0x14] sm:$0xf0] }
  0xc6   : > { %552 = vadd.xlane.f32.xlu1 %v518_v37  ;;  %1439 = vmatpush.bf16.msra.mxu1 %v2134_v9 }
  0xc7   : > { %1352 = vmatpush.bf16.msra.mxu0 %v2114_v23 }
  0xca   : > { %1440 = vmatpush.bf16.msra.mxu1 %v2126_v19 }
  0xcd   : > { %403 = vadd.xlane.f32.xlu2 %v2944_v42  ;;  %558 = vadd.xlane.f32.xlu0 %v521_v40 }
  0xce   : > { %399 = vadd.xlane.f32.xlu1 %v2947_v43  ;;  %1441 = vmatpush.bf16.msra.mxu1 %v2118_v27 }
  0xd2   : > { %1442 = vmatpush.bf16.msra.mxu1 %v2110_v53 }
  0xd5   : > { %405 = vadd.xlane.f32.xlu2 %v2956_v46  ;;  %560 = vadd.xlane.f32.xlu0 %v522_v45  ;;  %v2106_v45 = vor.u32 %v2232_v34, %v2105_v31 }
  0xd6   : > { %401 = vadd.xlane.f32.xlu1 %v2959_v47  ;;  %1443 = vmatpush.bf16.msra.mxu1 %v2102_v62 }
  0xd7   : > { %1353 = vmatpush.bf16.msra.mxu0 %v2106_v45 }
  0xdb   : > { %1354 = vmatpush.bf16.msra.mxu0 %v2098_v58 }
  0xdd   : > { %407 = vadd.xlane.f32.xlu0 %v2964_v48 }
  0xe5   : > { %409 = vadd.xlane.f32.xlu0 %v2968_v49 }
 0x128   : > { %v549_v10 = vpop.xlane.xlu0 %548 }
 0x129   : > { %v2971_v15 = vmul.f32 0.007874016, %v549_v10 }
 0x12b   : > { %2351 = vrsqrt.f32 %v2971_v15  ;;  %vm651_vm1 = vcmp.eq.f32.partialorder %v2971_v15, inf  ;;  %v654_v16 = vand.u32 2147483648, %v2971_v15  ;;  %vm653_vm2 = vcmp.eq.f32.partialorder %v2971_v15, 0.0 }
 0x130   : > { %v555_v29 = vpop.xlane.xlu2 %554  ;;  %v396_v30 = vpop.xlane.xlu0 %395 }
 0x131   : > { %v2352_v37 = vpop.eup %2351  ;;  %v2974_v39 = vmul.f32 0.007874016, %v555_v29  ;;  %v551_v40 = vpop.xlane.xlu1 %550  ;;  %v459_v41 = vmul.f32 %v2902_v13, %v396_v30 }
 0x132   : > { %v645_v51 = vmul.f32 %v2352_v37, %v2971_v15  ;;  %v2978_v52 = vmul.f32 0.007874016, %v551_v40 }
 0x133   : > { %2353 = vrsqrt.f32 %v2974_v39  ;;  %v2982_v54 = vsub.f32 %v2918_v28, %v459_v41  ;;  %vm687_vm5 = vcmp.eq.f32.partialorder %v2974_v39, inf  ;;  %vm689_vm6 = vcmp.eq.f32.partialorder %v2974_v39, 0.0 }
 0x134   : > { %2355 = vrsqrt.f32 %v2978_v52  ;;  %v646_v60 = vmul.f32 %v2352_v37, %v645_v51  ;;  %vm663_vm3 = vcmp.eq.f32.partialorder %v2978_v52, inf  ;;  %v666_v56 = vand.u32 2147483648, %v2978_v52 }
 0x135   : > { %v523_v61 = vmul.f32 %v2982_v54, %v2982_v54  ;;  %vm665_vm4 = vcmp.eq.f32.partialorder %v2978_v52, 0.0 }
 0x136   : > { %v647_v63 = vmul.f32 0.5, %v646_v60 }
 0x137   : > { %562 = vadd.xlane.f32.xlu1 %v523_v61 }
 0x138   : > { %v557_v0 = vpop.xlane.xlu2 %556  ;;  %v398_v28 = vpop.xlane.xlu0 %397  ;;  %v648_v1 = vsub.f32 1.5, %v647_v63 }
 0x139   : > { %v2354_v2 = vpop.eup %2353  ;;  %v2987_v3 = vmul.f32 0.007874016, %v557_v0  ;;  %v553_v4 = vpop.xlane.xlu1 %552  ;;  %v460_v5 = vmul.f32 %v2902_v13, %v398_v28 }
 0x13a   : > { %v2356_v6 = vpop.eup %2355  ;;  %v681_v7 = vmul.f32 %v2354_v2, %v2974_v39  ;;  %v2991_v8 = vmul.f32 0.007874016, %v553_v4  ;;  %v649_v9 = vmul.f32 %v2352_v37, %v648_v1 }
 0x13b   : > { %v657_v10 = vmul.f32 %v2356_v6, %v2978_v52  ;;  %2357 = vrsqrt.f32 %v2987_v3  ;;  %v2996_v11 = vsub.f32 %v2933_v36, %v460_v5  ;;  %vm699_vm10 = vcmp.eq.f32.partialorder %v2987_v3, inf }
 0x13c   : > { %2359 = vrsqrt.f32 %v2991_v8  ;;  %v650_v12 = vmul.f32 %v649_v9, %v2971_v15  ;;  %v682_v19 = vmul.f32 %v2354_v2, %v681_v7  ;;  %vm675_vm7 = vcmp.eq.f32.partialorder %v2991_v8, inf }
 0x13d   : > { %v524_v14 = vmul.f32 %v2996_v11, %v2996_v11  ;;  %v658_v18 = vmul.f32 %v2356_v6, %v657_v10  ;;  %vm677_vm8 = vcmp.eq.f32.partialorder %v2991_v8, 0.0  ;;  %vm701_vm12 = vcmp.eq.f32.partialorder %v2987_v3, 0.0 }
 0x13e   : > { %v652_v20 = vsel %vm651_vm1, %v2971_v15, %v650_v12  ;;  %v683_v22 = vmul.f32 0.5, %v682_v19  ;;  %v690_v12 = vand.u32 2147483648, %v2974_v39  ;;  %v3052_v19 = vld [vmem:[%s2881_s9 + $0x80] sm:$0xff] }
 0x13f   : > { %564 = vadd.xlane.f32.xlu1 %v524_v14  ;;  %v655_v36 = vsel %vm653_vm2, %v654_v16, %v652_v20  ;;  %v659_v21 = vmul.f32 0.5, %v658_v18 }
 0x140   : > { %v404_v23 = vpop.xlane.xlu2 %403  ;;  %v559_v26 = vpop.xlane.xlu0 %558  ;;  %v684_v35 = vsub.f32 1.5, %v683_v22  ;;  %v1028_v41 = vadd.f32 1e-06, %v655_v36 }
 0x141   : > { %v3006_v27 = vpop.eup %2357  ;;  %v463_v29 = vmul.f32 %v2902_v13, %v404_v23  ;;  %v400_v30 = vpop.xlane.xlu1 %399  ;;  %v3009_v31 = vmul.f32 0.007874016, %v559_v26  ;;  %v660_v34 = vsub.f32 1.5, %v659_v21 }
 0x142   : > { %v2360_v37 = vpop.eup %2359  ;;  %v693_v15 = vmul.f32 %v3006_v27, %v2987_v3  ;;  %v461_v40 = vmul.f32 %v2902_v13, %v400_v30  ;;  %v685_v57 = vmul.f32 %v2354_v2, %v684_v35 }
 0x143   : > { %v669_v45 = vmul.f32 %v2360_v37, %v2991_v8  ;;  %v3016_v50 = vsub.f32 %v2944_v42, %v463_v29  ;;  %2361 = vrsqrt.f32 %v3009_v31  ;;  %v661_v51 = vmul.f32 %v2356_v6, %v660_v34  ;;  %v3065_v29 = vld [vmem:[#allocation5] ss:$0 sm:$0xff] }
 0x144   : > { %v3020_v53 = vsub.f32 %v2947_v43, %v461_v40  ;;  %2363 = vrcp.f32 %v1028_v41  ;;  %v694_v62 = vmul.f32 %v3006_v27, %v693_v15  ;;  %v686_v1 = vmul.f32 %v685_v57, %v2974_v39 }
 0x145   : > { %v527_v58 = vmul.f32 %v3016_v50, %v3016_v50  ;;  %v662_v59 = vmul.f32 %v661_v51, %v2978_v52  ;;  %v670_v42 = vmul.f32 %v2360_v37, %v669_v45  ;;  %vm711_vm9 = vcmp.eq.f32.partialorder %v3009_v31, inf }
 0x146   : > { %v525_v60 = vmul.f32 %v3020_v53, %v3020_v53  ;;  %v695_v14 = vmul.f32 0.5, %v694_v62  ;;  %v688_v36 = vsel %vm687_vm5, %v2974_v39, %v686_v1  ;;  %vm713_vm11 = vcmp.eq.f32.partialorder %v3009_v31, 0.0 }
 0x147   : > { %570 = vadd.xlane.f32.xlu0 %v527_v58  ;;  %411 = vadd.xlane.f32.xlu1 %v3023_v55  ;;  %v664_v43 = vsel %vm663_vm3, %v2978_v52, %v662_v59  ;;  %v671_v61 = vmul.f32 0.5, %v670_v42  ;;  %v691_v30 = vsel %vm689_vm6, %v690_v12, %v688_v36  ;;  %v3082_v42 = vld [vmem:[%s2881_s9 + $0x98] sm:$0xff]  ;;  %v3108_v12 = vld [vmem:[%s2881_s9 + $0xa0] sm:$0xff] }
 0x148   : > { %566 = vadd.xlane.f32.xlu2 %v525_v60  ;;  %v406_v63 = vpop.xlane.xlu2 %405  ;;  %v3036_v0 = vpop.xlane.xlu0 %560  ;;  %v667_v28 = vsel %vm665_vm4, %v666_v56, %v664_v43  ;;  %v696_v15 = vsub.f32 1.5, %v695_v14  ;;  %v3086_v43 = vld [vmem:[%s2881_s9 + $0x88] sm:$0xff] }
 0x149   : > { %v2362_v2 = vpop.eup %2361  ;;  %v464_v4 = vmul.f32 %v2902_v13, %v406_v63  ;;  %v402_v5 = vpop.xlane.xlu1 %401  ;;  %v1029_v6 = vadd.f32 1e-06, %v667_v28  ;;  %v672_v9 = vsub.f32 1.5, %v671_v61 }
 0x14a   : > { %v705_v52 = vmul.f32 %v2362_v2, %v3009_v31  ;;  %v462_v7 = vmul.f32 %v2902_v13, %v402_v5  ;;  %v2364_v16 = vpop.eup %2363  ;;  %v697_v60 = vmul.f32 %v3006_v27, %v696_v15 }
 0x14b   : > { %v3044_v10 = vsub.f32 %v2956_v46, %v464_v4  ;;  %2365 = vrcp.f32 %v1029_v6  ;;  %v673_v20 = vmul.f32 %v2360_v37, %v672_v9  ;;  %v678_v46 = vand.u32 2147483648, %v2991_v8 }
 0x14c   : > { %v3049_v18 = vsub.f32 %v2959_v47, %v462_v7  ;;  %v706_v22 = vmul.f32 %v2362_v2, %v705_v52  ;;  %v1093_v26 = vmul.f32 %v2364_v16, %v2905_v17  ;;  %v1031_v17 = vadd.f32 1e-06, %v691_v30  ;;  %v3113_v16 = vld [vmem:[%s2881_s9 + $0x90] sm:$0xff] }
 0x14d   : > { %v528_v21 = vmul.f32 %v3044_v10, %v3044_v10  ;;  %v674_v47 = vmul.f32 %v673_v20, %v2991_v8  ;;  %v698_v28 = vmul.f32 %v697_v60, %v2987_v3  ;;  %v714_v4 = vand.u32 2147483648, %v3009_v31 }
 0x14e   : > { %v526_v23 = vmul.f32 %v3049_v18, %v3049_v18  ;;  %v707_v34 = vmul.f32 0.5, %v706_v22  ;;  %v1128_v58 = vmul.f32 %v3065_v29, %v1093_v26  ;;  %v702_v7 = vand.u32 2147483648, %v2987_v3 }
 0x14f   : > { %572 = vadd.xlane.f32.xlu0 %v528_v21  ;;  %413 = vadd.xlane.f32.xlu1 %v3052_v19  ;;  %v676_v37 = vsel %vm675_vm7, %v2991_v8, %v674_v47  ;;  %v3079_v8 = vld [vmem:[%s3801_s2] ss:$0 sm:$0xff]  ;;  %v700_v14 = vsel %vm699_vm10, %v2987_v3, %v698_v28  ;;  %v3124_v47 = vld [vmem:[%s2881_s9 + $0xa8] sm:$0xff] }
 0x150   : > { %568 = vadd.xlane.f32.xlu2 %v526_v23  ;;  %v408_v35 = vpop.xlane.xlu0 %407  ;;  %v679_v41 = vsel %vm677_vm8, %v678_v46, %v676_v37  ;;  %v708_v45 = vsub.f32 1.5, %v707_v34  ;;  %v1164_v62 = vadd.f32 %v3079_v8, %v1128_v58  ;;  %v703_v21 = vsel %vm701_vm12, %v702_v7, %v700_v14  ;;  %v2249_v14 = vld [vmem:[#allocation8 + $0x20] sm:$0xff] }
 0x151   : > { %v465_v40 = vmul.f32 %v2902_v13, %v408_v35  ;;  %v2366_v51 = vpop.eup %2365  ;;  %v1030_v56 = vadd.f32 1e-06, %v679_v41  ;;  %v1032_v22 = vadd.f32 1e-06, %v703_v21  ;;  %v3130_v35 = vld [vmem:[%s2881_s9 + $0xb0] sm:$0xff]  ;;  %v2248_v21 = vld [vmem:[#allocation8 + $0x18] sm:$0xff] }
 0x152   : > { %v1094_v39 = vmul.f32 %v2366_v51, %v2913_v25  ;;  %v709_v59 = vmul.f32 %v2362_v2, %v708_v45 }
 0x153   : > { %v3072_v57 = vsub.f32 %v2964_v48, %v465_v40  ;;  %2367 = vrcp.f32 %v1030_v56 }
 0x154   : > { %v1129_v25 = vmul.f32 %v3065_v29, %v1094_v39  ;;  %2369 = vrcp.f32 %v1031_v17  ;;  %v710_v61 = vmul.f32 %v709_v59, %v3009_v31  ;;  %v618_v17 = vmul.f32 0.007874016, %v3036_v0 }
 0x155   : > { %v529_v48 = vmul.f32 %v3072_v57, %v3072_v57 }
 0x156   : > { %v1165_v63 = vadd.f32 %v3079_v8, %v1129_v25  ;;  %v712_v6 = vsel %vm711_vm9, %v3009_v31, %v710_v61  ;;  %vm723_vm13 = vcmp.eq.f32.partialorder %v618_v17, inf  ;;  %v726_v0 = vand.u32 2147483648, %v618_v17 }
 0x157   : > { %419 = vadd.xlane.f32.xlu0 %v3082_v42  ;;  %574 = vadd.xlane.f32.xlu1 %v529_v48  ;;  %v715_v20 = vsel %vm713_vm11, %v714_v4, %v712_v6  ;;  %v2260_v48 = vld [vmem:[#allocation8 + $0x78] sm:$0xff]  ;;  %vm725_vm14 = vcmp.eq.f32.partialorder %v618_v17, 0.0 }
 0x158   : > { %415 = vadd.xlane.f32.xlu2 %v3086_v43  ;;  %v410_v27 = vpop.xlane.xlu0 %409  ;;  %v1246_v2 = vpack.c.bf16 %v1165_v63, %v1164_v62  ;;  %v1033_v46 = vadd.f32 1e-06, %v715_v20  ;;  %1809 = vmatpush.bf16.msra.mxu3 %v2260_v48  ;;  %v2251_v63 = vld [vmem:[#allocation8 + $0x30] sm:$0xff] }
 0x159   : > { %v466_v1 = vmul.f32 %v2902_v13, %v410_v27  ;;  %v2368_v5 = vpop.eup %2367  ;;  %v2259_v27 = vld [vmem:[#allocation8 + $0x70] sm:$0xff] }
 0x15a   : > { %1355 = vmatmul.bf16.vlgmr.msra.gmra.mxu0 %v1246_v2  ;;  %1444 = vmatmul.bf16.vlgmr.msra.gmra.mxu1 %v1246_v2  ;;  %v2370_v9 = vpop.eup %2369  ;;  %2371 = vrcp.f32 %v1033_v46  ;;  %v2258_v2 = vld [vmem:[#allocation8 + $0x68] sm:$0xff]  ;;  %v2256_v46 = vld [vmem:[#allocation8 + $0x58] sm:$0xff] }
 0x15b   : > { %v3104_v52 = vsub.f32 %v2968_v49, %v466_v1  ;;  %v1095_v49 = vmul.f32 %v2368_v5, %v2927_v33  ;;  %v1096_v36 = vmul.f32 %v2370_v9, %v2911_v24  ;;  %2373 = vrcp.f32 %v1032_v22  ;;  %v2250_v1 = vld [vmem:[#allocation8 + $0x28] sm:$0xff] }
 0x15c   : > { %2375 = vrsqrt.f32 %v618_v17  ;;  %1810 = vmatpush.bf16.msra.mxu3 %v2259_v27 }
 0x15d   : > { %v530_v31 = vmul.f32 %v3104_v52, %v3104_v52  ;;  %v1130_v3 = vmul.f32 %v3065_v29, %v1095_v49  ;;  %v1131_v23 = vmul.f32 %v3065_v29, %v1096_v36 }
 0x15f   : > { %421 = vadd.xlane.f32.xlu0 %v3108_v12  ;;  %576 = vadd.xlane.f32.xlu1 %v530_v31  ;;  %v1166_v33 = vadd.f32 %v3079_v8, %v1130_v3  ;;  %v1167_v24 = vadd.f32 %v3079_v8, %v1131_v23  ;;  %v2257_v31 = vld [vmem:[#allocation8 + $0x60] sm:$0xff] }
 0x160   : > { %417 = vadd.xlane.f32.xlu2 %v3113_v16  ;;  %v2372_v30 = vpop.eup %2371  ;;  %1811 = vmatpush.bf16.msra.mxu3 %v2258_v2 }
 0x161   : > { %v1247_v26 = vpack.c.bf16 %v1167_v24, %v1166_v33  ;;  %v2374_v34 = vpop.eup %2373  ;;  %v1098_v37 = vmul.f32 %v2372_v30, %v2938_v38 }
 0x162   : > { %v1097_v15 = vmul.f32 %v2374_v34, %v2925_v32  ;;  %v2376_v39 = vpop.eup %2375  ;;  %v2252_v32 = vld [vmem:[#allocation8 + $0x38] sm:$0xff] }
 0x163   : > { %v1133_v40 = vmul.f32 %v3065_v29, %v1098_v37  ;;  %v717_v38 = vmul.f32 %v2376_v39, %v618_v17  ;;  %1720 = vmatpush.bf16.msra.mxu2 %v2252_v32  ;;  %v2247_v37 = vld [vmem:[#allocation8 + $0x10] sm:$0xff] }
 0x164   : > { %v1132_v41 = vmul.f32 %v3065_v29, %v1097_v15  ;;  %1812 = vmatpush.bf16.msra.mxu3 %v2257_v31  ;;  %v2255_v15 = vld [vmem:[#allocation8 + $0x50] sm:$0xff] }
 0x165   : > { %v1169_v45 = vadd.f32 %v3079_v8, %v1133_v40  ;;  %v718_v58 = vmul.f32 %v2376_v39, %v717_v38 }
 0x166   : > { %v1168_v51 = vadd.f32 %v3079_v8, %v1132_v41 }
 0x167   : > { %423 = vadd.xlane.f32.xlu1 %v3124_v47  ;;  %v719_v59 = vmul.f32 0.5, %v718_v58  ;;  %1721 = vmatpush.bf16.msra.mxu2 %v2251_v63 }
 0x168   : > { %v1248_v56 = vpack.c.bf16 %v1169_v45, %v1168_v51  ;;  %1813 = vmatpush.bf16.msra.mxu3 %v2256_v46 }
 0x169   : > { %v720_v60 = vsub.f32 1.5, %v719_v59  ;;  %v2246_v59 = vld [vmem:[#allocation8 + $0x8] sm:$0xff] }
 0x16a   : > { %1360 = vmatmul.bf16.gmra.mxu0 %v1247_v26  ;;  %1449 = vmatmul.bf16.gmra.mxu1 %v1247_v26 }
 0x16b   : > { %v721_v25 = vmul.f32 %v2376_v39, %v720_v60  ;;  %1722 = vmatpush.bf16.msra.mxu2 %v2250_v1 }
 0x16c   : > { %1814 = vmatpush.bf16.msra.mxu3 %v2255_v15 }
 0x16d   : > { %v722_v28 = vmul.f32 %v721_v25, %v618_v17 }
 0x16f   : > { %425 = vadd.xlane.f32.xlu1 %v3130_v35  ;;  %v724_v4 = vsel %vm723_vm13, %v618_v17, %v722_v28  ;;  %1723 = vmatpush.bf16.msra.mxu2 %v2249_v14  ;;  %v2253_v14 = vld [vmem:[#allocation8 + $0x40] sm:$0xff] }
 0x170   : > { %v727_v6 = vsel %vm725_vm14, %v726_v0, %v724_v4 }
 0x171   : > { %v1034_v20 = vadd.f32 1e-06, %v727_v6 }
 0x173   : > { %1724 = vmatpush.bf16.msra.mxu2 %v2248_v21 }
 0x177   : > { %1725 = vmatpush.bf16.msra.mxu2 %v2247_v37 }
 0x17a   : > { %1365 = vmatmul.bf16.gmra.mxu0 %v1248_v56  ;;  %1454 = vmatmul.bf16.gmra.mxu1 %v1248_v56 }
 0x17b   : > { %1726 = vmatpush.bf16.msra.mxu2 %v2246_v59 }
 0x1aa   : > { %v563_v61 = vpop.xlane.xlu1 %562 }
 0x1ab   : > { %v3140_v62 = vmul.f32 0.007874016, %v563_v61 }
 0x1ad   : > { %2377 = vrsqrt.f32 %v3140_v62  ;;  %vm735_vm15 = vcmp.eq.f32.partialorder %v3140_v62, inf  ;;  %v738_v58 = vand.u32 2147483648, %v3140_v62  ;;  %vm737_vm0 = vcmp.eq.f32.partialorder %v3140_v62, 0.0 }
 0x1b2   : > { %v565_v5 = vpop.xlane.xlu1 %564 }
 0x1b3   : > { %v2378_v7 = vpop.eup %2377  ;;  %v3143_v9 = vmul.f32 0.007874016, %v565_v5  ;;  %v2245_v5 = vld [vmem:[#allocation8] sm:$0xff] }
 0x1b4   : > { %v729_v49 = vmul.f32 %v2378_v7, %v3140_v62  ;;  %1727 = vmatpush.bf16.msra.mxu2 %v2245_v5 }
 0x1b5   : > { %2379 = vrsqrt.f32 %v3143_v9  ;;  %vm747_vm1 = vcmp.eq.f32.partialorder %v3143_v9, inf  ;;  %v750_v46 = vand.u32 2147483648, %v3143_v9  ;;  %vm749_vm2 = vcmp.eq.f32.partialorder %v3143_v9, 0.0 }
 0x1b6   : > { %v730_v36 = vmul.f32 %v2378_v7, %v729_v49  ;;  %2381 = vrcp.f32 %v1034_v20 }
 0x1b8   : > { %v731_v3 = vmul.f32 0.5, %v730_v36 }
 0x1ba   : > { %v412_v22 = vpop.xlane.xlu1 %411  ;;  %v571_v23 = vpop.xlane.xlu0 %570  ;;  %v732_v33 = vsub.f32 1.5, %v731_v3 }
 0x1bb   : > { %v2380_v24 = vpop.eup %2379  ;;  %v567_v26 = vpop.xlane.xlu2 %566  ;;  %v467_v30 = vmul.f32 %v2902_v13, %v412_v22  ;;  %v3148_v34 = vmul.f32 0.007874016, %v571_v23 }
 0x1bc   : > { %v741_v40 = vmul.f32 %v2380_v24, %v3143_v9  ;;  %v3151_v41 = vmul.f32 0.007874016, %v567_v26  ;;  %v733_v45 = vmul.f32 %v2378_v7, %v732_v33  ;;  %v2382_v39 = vpop.eup %2381 }
 0x1bd   : > { %v3154_v51 = vsub.f32 %v3023_v55, %v467_v30  ;;  %2383 = vrsqrt.f32 %v3148_v34  ;;  %v2254_v55 = vld [vmem:[#allocation8 + $0x48] sm:$0xff]  ;;  %v1099_v27 = vmul.f32 %v2382_v39, %v2950_v44  ;;  %vm783_vm5 = vcmp.eq.f32.partialorder %v3148_v34, inf }
 0x1be   : > { %2385 = vrsqrt.f32 %v3151_v41  ;;  %v734_v56 = vmul.f32 %v733_v45, %v3140_v62  ;;  %v742_v17 = vmul.f32 %v2380_v24, %v741_v40  ;;  %1815 = vmatpush.bf16.msra.mxu3 %v2254_v55  ;;  %vm759_vm3 = vcmp.eq.f32.partialorder %v3151_v41, inf }
 0x1bf   : > { %v531_v38 = vmul.f32 %v3154_v51, %v3154_v51  ;;  %v1134_v20 = vmul.f32 %v3065_v29, %v1099_v27  ;;  %vm761_vm4 = vcmp.eq.f32.partialorder %v3151_v41, 0.0  ;;  %vm785_vm7 = vcmp.eq.f32.partialorder %v3148_v34, 0.0 }
 0x1c0   : > { %v736_v60 = vsel %vm735_vm15, %v3140_v62, %v734_v56  ;;  %v743_v32 = vmul.f32 0.5, %v742_v17 }
 0x1c1   : > { %578 = vadd.xlane.f32.xlu2 %v531_v38  ;;  %v739_v48 = vsel %vm737_vm0, %v738_v58, %v736_v60  ;;  %v1170_v15 = vadd.f32 %v3079_v8, %v1134_v20  ;;  %v762_v60 = vand.u32 2147483648, %v3151_v41 }
 0x1c2   : > { %v414_v25 = vpop.xlane.xlu1 %413  ;;  %v573_v61 = vpop.xlane.xlu0 %572  ;;  %v1035_v63 = vadd.f32 1e-06, %v739_v48  ;;  %v744_v28 = vsub.f32 1.5, %v743_v32  ;;  %1816 = vmatpush.bf16.msra.mxu3 %v2253_v14 }
 0x1c3   : > { %v2384_v0 = vpop.eup %2383  ;;  %v569_v1 = vpop.xlane.xlu2 %568  ;;  %v468_v2 = vmul.f32 %v2902_v13, %v414_v25  ;;  %v3167_v4 = vmul.f32 0.007874016, %v573_v61 }
 0x1c4   : > { %v2386_v6 = vpop.eup %2385  ;;  %v777_v62 = vmul.f32 %v2384_v0, %v3148_v34  ;;  %v3170_v7 = vmul.f32 0.007874016, %v569_v1  ;;  %2387 = vrcp.f32 %v1035_v63  ;;  %v745_v31 = vmul.f32 %v2380_v24, %v744_v28  ;;  %v3208_v63 = vld [vmem:[%s2881_s9 + $0xb8] sm:$0xff] }
 0x1c5   : > { %v753_v49 = vmul.f32 %v2386_v6, %v3151_v41  ;;  %v3174_v44 = vsub.f32 %v3052_v19, %v468_v2  ;;  %2389 = vrsqrt.f32 %v3167_v4  ;;  %vm795_vm9 = vcmp.eq.f32.partialorder %v3167_v4, inf }
 0x1c6   : > { %2391 = vrsqrt.f32 %v3170_v7  ;;  %v746_v36 = vmul.f32 %v745_v31, %v3143_v9  ;;  %v778_v19 = vmul.f32 %v2384_v0, %v777_v62  ;;  %vm771_vm6 = vcmp.eq.f32.partialorder %v3170_v7, inf }
 0x1c7   : > { %v532_v21 = vmul.f32 %v3174_v44, %v3174_v44  ;;  %v754_v3 = vmul.f32 %v2386_v6, %v753_v49  ;;  %vm773_vm8 = vcmp.eq.f32.partialorder %v3170_v7, 0.0  ;;  %vm797_vm12 = vcmp.eq.f32.partialorder %v3167_v4, 0.0 }
 0x1c8   : > { %v748_v22 = vsel %vm747_vm1, %v3143_v9, %v746_v36  ;;  %v779_v24 = vmul.f32 0.5, %v778_v19 }
 0x1c9   : > { %580 = vadd.xlane.f32.xlu2 %v532_v21  ;;  %v751_v23 = vsel %vm749_vm2, %v750_v46, %v748_v22  ;;  %v755_v33 = vmul.f32 0.5, %v754_v3 }
 0x1ca   : > { %v2388_v26 = vpop.eup %2387  ;;  %v575_v30 = vpop.xlane.xlu1 %574  ;;  %v1036_v40 = vadd.f32 1e-06, %v751_v23  ;;  %v780_v32 = vsub.f32 1.5, %v779_v24 }
 0x1cb   : > { %v420_v37 = vpop.xlane.xlu0 %419  ;;  %v3188_v45 = vpop.eup %2389  ;;  %v3190_v17 = vmul.f32 0.007874016, %v575_v30  ;;  %v1100_v39 = vmul.f32 %v2388_v26, %v2982_v54  ;;  %v756_v38 = vsub.f32 1.5, %v755_v33  ;;  %v786_v30 = vand.u32 2147483648, %v3148_v34 }
 0x1cc   : > { %v416_v56 = vpop.xlane.xlu2 %415  ;;  %v471_v9 = vmul.f32 %v2902_v13, %v420_v37  ;;  %v2392_v58 = vpop.eup %2391  ;;  %v789_v59 = vmul.f32 %v3188_v45, %v3167_v4  ;;  %v781_v28 = vmul.f32 %v2384_v0, %v780_v32 }
 0x1cd   : > { %v469_v55 = vmul.f32 %v2902_v13, %v416_v56  ;;  %v765_v48 = vmul.f32 %v2392_v58, %v3170_v7  ;;  %2393 = vrsqrt.f32 %v3190_v17  ;;  %v1135_v61 = vmul.f32 %v3065_v29, %v1100_v39 }
 0x1ce   : > { %v3201_v25 = vsub.f32 %v3082_v42, %v471_v9  ;;  %v757_v27 = vmul.f32 %v2386_v6, %v756_v38  ;;  %2395 = vrcp.f32 %v1036_v40  ;;  %v790_v62 = vmul.f32 %v3188_v45, %v789_v59 }
 0x1cf   : > { %v3205_v54 = vsub.f32 %v3086_v43, %v469_v55  ;;  %v1171_v2 = vadd.f32 %v3079_v8, %v1135_v61  ;;  %v766_v5 = vmul.f32 %v2392_v58, %v765_v48  ;;  %v782_v20 = vmul.f32 %v781_v28, %v3148_v34 }
 0x1d0   : > { %v535_v1 = vmul.f32 %v3201_v25, %v3201_v25  ;;  %v758_v14 = vmul.f32 %v757_v27, %v3151_v41  ;;  %v791_v19 = vmul.f32 0.5, %v790_v62  ;;  %v774_v38 = vand.u32 2147483648, %v3170_v7 }
 0x1d1   : > { %v533_v42 = vmul.f32 %v3205_v54, %v3205_v54  ;;  %427 = vadd.xlane.f32.xlu2 %v3208_v63  ;;  %v1249_v43 = vpack.c.bf16 %v1171_v2, %v1170_v15  ;;  %v767_v0 = vmul.f32 0.5, %v766_v5  ;;  %v3239_v15 = vld [vmem:[%s2881_s9 + $0xc0] sm:$0xff]  ;;  %v784_v56 = vsel %vm783_vm5, %v3148_v34, %v782_v20 }
 0x1d2   : > { %586 = vadd.xlane.f32.xlu1 %v535_v1  ;;  %v3219_v6 = vpop.xlane.xlu1 %576  ;;  %v760_v49 = vsel %vm759_vm3, %v3151_v41, %v758_v14  ;;  %v792_v32 = vsub.f32 1.5, %v791_v19  ;;  %v787_v48 = vsel %vm785_vm7, %v786_v30, %v784_v56  ;;  %vm807_vm10 = vcmp.eq.f32.partialorder %v3190_v17, inf }
 0x1d3   : > { %582 = vadd.xlane.f32.xlu0 %v533_v42  ;;  %v422_v31 = vpop.xlane.xlu0 %421  ;;  %v2394_v36 = vpop.eup %2393  ;;  %1370 = vmatmul.bf16.gmra.mxu0 %v1249_v43  ;;  %v763_v3 = vsel %vm761_vm4, %v762_v60, %v760_v49  ;;  %v768_v41 = vsub.f32 1.5, %v767_v0  ;;  %v1039_v14 = vadd.f32 1e-06, %v787_v48  ;;  %vm809_vm11 = vcmp.eq.f32.partialorder %v3190_v17, 0.0 }
 0x1d4   : > { %v418_v21 = vpop.xlane.xlu2 %417  ;;  %v472_v46 = vmul.f32 %v2902_v13, %v422_v31  ;;  %1459 = vmatmul.bf16.gmra.mxu1 %v1249_v43  ;;  %v2396_v22 = vpop.eup %2395  ;;  %v801_v23 = vmul.f32 %v2394_v36, %v3190_v17  ;;  %v1037_v24 = vadd.f32 1e-06, %v763_v3  ;;  %v793_v43 = vmul.f32 %v3188_v45, %v792_v32  ;;  %v3276_v3 = vld [vmem:[%s2881_s9 + $0xc8] sm:$0xff] }
 0x1d5   : > { %v470_v33 = vmul.f32 %v2902_v13, %v418_v21  ;;  %v769_v40 = vmul.f32 %v2392_v58, %v768_v41  ;;  %v1101_v39 = vmul.f32 %v2396_v22, %v2996_v11  ;;  %v3273_v21 = vld [vmem:[%s2881_s9 + $0xd8] sm:$0xff] }
 0x1d6   : > { %v3230_v26 = vsub.f32 %v3108_v12, %v472_v46  ;;  %2397 = vrcp.f32 %v1037_v24  ;;  %v1212_v12 = vld [vmem:[%s3803_s4] sm:$0x3]  ;;  %v802_v59 = vmul.f32 %v2394_v36, %v801_v23  ;;  %v794_v23 = vmul.f32 %v793_v43, %v3167_v4 }
 0x1d7   : > { %v3236_v37 = vsub.f32 %v3113_v16, %v470_v33  ;;  %v1356_v16 = vpop.f32.mrf.mxu0  ;;  %v1445_v55 = vpop.f32.mrf.mxu1  ;;  %v770_v58 = vmul.f32 %v769_v40, %v3170_v7  ;;  %v3256_v61 = vperm.slane %v1212_v12, 0  ;;  %v3258_v27 = vperm.slane %v1212_v12, 1 }
 0x1d8   : > { %v536_v9 = vmul.f32 %v3230_v26, %v3230_v26  ;;  %v803_v11 = vmul.f32 0.5, %v802_v59  ;;  %v1136_v5 = vmul.f32 %v3065_v29, %v1101_v39 }
 0x1d9   : > { %v534_v60 = vmul.f32 %v3236_v37, %v3236_v37  ;;  %429 = vadd.xlane.f32.xlu2 %v3239_v15  ;;  %v772_v1 = vsel %vm771_vm6, %v3170_v7, %v770_v58  ;;  %v1357_v20 = vadd.f32 %v1356_v16, %v3256_v61  ;;  %v1446_v7 = vadd.f32 %v1445_v55, %v3258_v27 }
 0x1da   : > { %588 = vadd.xlane.f32.xlu1 %v536_v9  ;;  %v424_v28 = vpop.xlane.xlu1 %423  ;;  %v775_v62 = vsel %vm773_vm8, %v774_v38, %v772_v1  ;;  %v804_v0 = vsub.f32 1.5, %v803_v11  ;;  %v1172_v22 = vadd.f32 %v3079_v8, %v1136_v5  ;;  %v810_v9 = vand.u32 2147483648, %v3190_v17  ;;  %v3306_v1 = vld [vmem:[%s2881_s9 + $0xe0] sm:$0xff]  ;;  %v3311_v5 = vld [vmem:[%s2881_s9 + $0xd0] sm:$0xff] }
 0x1db   : > { %584 = vadd.xlane.f32.xlu0 %v534_v60  ;;  %v473_v2 = vmul.f32 %v2902_v13, %v424_v28  ;;  %v1038_v42 = vadd.f32 1e-06, %v775_v62  ;;  %v1525_v30 = vmax.f32 %v1357_v20, 0.0  ;;  %v1526_v40 = vmax.f32 %v1446_v7, 0.0 }
 0x1dc   : > { %v2398_v34 = vpop.eup %2397  ;;  %v805_v46 = vmul.f32 %v2394_v36, %v804_v0  ;;  %v796_v60 = vsel %vm795_vm9, %v3167_v4, %v794_v23  ;;  %v798_v58 = vand.u32 2147483648, %v3167_v4 }
 0x1dd   : > { %v3267_v31 = vsub.f32 %v3124_v47, %v473_v2  ;;  %v1102_v49 = vmul.f32 %v2398_v34, %v3020_v53  ;;  %2399 = vrcp.f32 %v1038_v42 }
 0x1de   : > { %2401 = vrcp.f32 %v1039_v14  ;;  %v806_v36 = vmul.f32 %v805_v46, %v3190_v17  ;;  %v799_v14 = vsel %vm797_vm12, %v798_v58, %v796_v60 }
 0x1df   : > { %v537_v19 = vmul.f32 %v3267_v31, %v3267_v31  ;;  %v1137_v45 = vmul.f32 %v3065_v29, %v1102_v49  ;;  %v1358_v53 = vpop.f32.mrf.mxu0  ;;  %v1447_v47 = vpop.f32.mrf.mxu1  ;;  %v1040_v0 = vadd.f32 1e-06, %v799_v14 }
 0x1e0   : > { %v1359_v33 = vadd.f32 %v1358_v53, %v3256_v61  ;;  %v1448_v24 = vadd.f32 %v1447_v47, %v3258_v27  ;;  %v808_v12 = vsel %vm807_vm10, %v3190_v17, %v806_v36 }
 0x1e1   : > { %590 = vadd.xlane.f32.xlu2 %v537_v19  ;;  %v1173_v41 = vadd.f32 %v3079_v8, %v1137_v45  ;;  %v811_v2 = vsel %vm809_vm11, %v810_v9, %v808_v12  ;;  %v3332_v12 = vld [vmem:[%s2881_s9 + $0xf0] sm:$0xff] }
 0x1e2   : > { %435 = vadd.xlane.f32.xlu1 %v3273_v21  ;;  %v426_v56 = vpop.xlane.xlu1 %425  ;;  %v1527_v39 = vmax.f32 %v1359_v33, 0.0  ;;  %v1528_v38 = vmax.f32 %v1448_v24, 0.0  ;;  %v1041_v17 = vadd.f32 1e-06, %v811_v2 }
 0x1e3   : > { %431 = vadd.xlane.f32.xlu0 %v3276_v3  ;;  %v474_v59 = vmul.f32 %v2902_v13, %v426_v56  ;;  %v1250_v16 = vpack.c.bf16 %v1173_v41, %v1172_v22  ;;  %v2400_v55 = vpop.eup %2399 }
 0x1e4   : > { %v1589_v48 = vpack.c.bf16 %v1527_v39, %v1525_v30  ;;  %v1590_v11 = vpack.c.bf16 %v1528_v38, %v1526_v40  ;;  %v2402_v28 = vpop.eup %2401  ;;  %v1103_v62 = vmul.f32 %v2400_v55, %v3049_v18  ;;  %2403 = vrcp.f32 %v1041_v17  ;;  %v3323_v18 = vld [vmem:[%s2881_s9 + $0xe8] sm:$0xff] }
 0x1e5   : > { %v3302_v32 = vsub.f32 %v3130_v35, %v474_v59  ;;  %1375 = vmatmul.bf16.gmra.mxu0 %v1250_v16  ;;  %1464 = vmatmul.bf16.gmra.mxu1 %v1250_v16  ;;  %v1104_v4 = vmul.f32 %v2402_v28, %v3016_v50  ;;  %2405 = vrcp.f32 %v1040_v0 }
 0x1e6   : > { %1728 = vmatmul.bf16.vlgmr.msra.gmra.mxu2 %v1589_v48  ;;  %1817 = vmatmul.bf16.vlgmr.msra.gmra.mxu3 %v1590_v11  ;;  %v1138_v43 = vmul.f32 %v3065_v29, %v1103_v62 }
 0x1e7   : > { %v538_v35 = vmul.f32 %v3302_v32, %v3302_v32  ;;  %v1361_v34 = vpop.f32.mrf.mxu0  ;;  %v1450_v42 = vpop.f32.mrf.mxu1  ;;  %v1139_v49 = vmul.f32 %v3065_v29, %v1104_v4 }
 0x1e8   : > { %v1362_v20 = vadd.f32 %v1361_v34, %v3256_v61  ;;  %v1451_v7 = vadd.f32 %v1450_v42, %v3258_v27  ;;  %v1174_v46 = vadd.f32 %v3079_v8, %v1138_v43  ;;  %v626_v43 = vmul.f32 0.007874016, %v3219_v6 }
 0x1e9   : > { %592 = vadd.xlane.f32.xlu2 %v538_v35  ;;  %v1175_v47 = vadd.f32 %v3079_v8, %v1139_v49 }
 0x1ea   : > { %437 = vadd.xlane.f32.xlu1 %v3306_v1  ;;  %v1529_v22 = vmax.f32 %v1362_v20, 0.0  ;;  %v2404_v23 = vpop.eup %2403  ;;  %v1530_v36 = vmax.f32 %v1451_v7, 0.0  ;;  %2407 = vrsqrt.f32 %v626_v43  ;;  %vm819_vm13 = vcmp.eq.f32.partialorder %v626_v43, inf }
 0x1eb   : > { %433 = vadd.xlane.f32.xlu0 %v3311_v5  ;;  %v1251_v41 = vpack.c.bf16 %v1175_v47, %v1174_v46  ;;  %v2406_v30 = vpop.eup %2405  ;;  %v1106_v9 = vmul.f32 %v2404_v23, %v3072_v57  ;;  %v822_v47 = vand.u32 2147483648, %v626_v43  ;;  %vm821_vm14 = vcmp.eq.f32.partialorder %v626_v43, 0.0 }
 0x1ec   : > { %v1105_v59 = vmul.f32 %v2406_v30, %v3044_v10 }
 0x1ed   : > { %v1141_v16 = vmul.f32 %v3065_v29, %v1106_v9 }
 0x1ee   : > { %v1140_v55 = vmul.f32 %v3065_v29, %v1105_v59 }
 0x1ef   : > { %v1363_v19 = vpop.f32.mrf.mxu0  ;;  %v1452_v50 = vpop.f32.mrf.mxu1  ;;  %v1177_v60 = vadd.f32 %v3079_v8, %v1141_v16 }
 0x1f0   : > { %v1364_v45 = vadd.f32 %v1363_v19, %v3256_v61  ;;  %v1453_v53 = vadd.f32 %v1452_v50, %v3258_v27  ;;  %v1176_v28 = vadd.f32 %v3079_v8, %v1140_v55  ;;  %v2408_v0 = vpop.eup %2407 }
 0x1f1   : > { %439 = vadd.xlane.f32.xlu2 %v3323_v18  ;;  %v813_v49 = vmul.f32 %v2408_v0, %v626_v43 }
 0x1f2   : > { %v1531_v33 = vmax.f32 %v1364_v45, 0.0  ;;  %v1532_v24 = vmax.f32 %v1453_v53, 0.0  ;;  %v1252_v35 = vpack.c.bf16 %v1177_v60, %v1176_v28 }
 0x1f3   : > { %v814_v20 = vmul.f32 %v2408_v0, %v813_v49 }
 0x1f4   : > { %v1591_v40 = vpack.c.bf16 %v1531_v33, %v1529_v22  ;;  %v1592_v56 = vpack.c.bf16 %v1532_v24, %v1530_v36 }
 0x1f5   : > { %1380 = vmatmul.bf16.gmra.mxu0 %v1251_v41  ;;  %1469 = vmatmul.bf16.gmra.mxu1 %v1251_v41  ;;  %v815_v7 = vmul.f32 0.5, %v814_v20 }
 0x1f6   : > { %1733 = vmatmul.bf16.gmra.mxu2 %v1591_v40  ;;  %1822 = vmatmul.bf16.gmra.mxu3 %v1592_v56 }
 0x1f7   : > { %v1366_v39 = vpop.f32.mrf.mxu0  ;;  %v1455_v38 = vpop.f32.mrf.mxu1  ;;  %v816_v46 = vsub.f32 1.5, %v815_v7 }
 0x1f8   : > { %v1367_v58 = vadd.f32 %v1366_v39, %v3256_v61  ;;  %v1456_v48 = vadd.f32 %v1455_v38, %v3258_v27 }
 0x1f9   : > { %441 = vadd.xlane.f32.xlu2 %v3332_v12  ;;  %v817_v19 = vmul.f32 %v2408_v0, %v816_v46 }
 0x1fa   : > { %v1533_v62 = vmax.f32 %v1367_v58, 0.0  ;;  %v1534_v34 = vmax.f32 %v1456_v48, 0.0 }
 0x1fb   : > { %v818_v50 = vmul.f32 %v817_v19, %v626_v43 }
 0x1fd   : > { %v820_v22 = vsel %vm819_vm13, %v626_v43, %v818_v50 }
 0x1fe   : > { %v823_v23 = vsel %vm821_vm14, %v822_v47, %v820_v22 }
 0x1ff   : > { %v1368_v11 = vpop.f32.mrf.mxu0  ;;  %v1457_v57 = vpop.f32.mrf.mxu1  ;;  %v1042_v33 = vadd.f32 1e-06, %v823_v23 }
 0x200   : > { %v1369_v2 = vadd.f32 %v1368_v11, %v3256_v61  ;;  %v1458_v10 = vadd.f32 %v1457_v57, %v3258_v27 }
 0x202   : > { %v1535_v42 = vmax.f32 %v1369_v2, 0.0  ;;  %v1536_v14 = vmax.f32 %v1458_v10, 0.0 }
 0x204   : > { %v1593_v4 = vpack.c.bf16 %v1535_v42, %v1533_v62  ;;  %v1594_v17 = vpack.c.bf16 %v1536_v14, %v1534_v34 }
 0x205   : > { %1385 = vmatmul.bf16.gmra.mxu0 %v1252_v35  ;;  %1474 = vmatmul.bf16.gmra.mxu1 %v1252_v35 }
 0x206   : > { %1738 = vmatmul.bf16.gmra.mxu2 %v1593_v4  ;;  %1827 = vmatmul.bf16.gmra.mxu3 %v1594_v17 }
 0x234   : > { %v579_v45 = vpop.xlane.xlu2 %578 }
 0x235   : > { %v627_v53 = vmul.f32 0.007874016, %v579_v45 }
 0x237   : > { %2409 = vrsqrt.f32 %v627_v53  ;;  %vm831_vm15 = vcmp.eq.f32.partialorder %v627_v53, inf  ;;  %v834_v35 = vand.u32 2147483648, %v627_v53  ;;  %vm833_vm0 = vcmp.eq.f32.partialorder %v627_v53, 0.0 }
 0x23c   : > { %v581_v36 = vpop.xlane.xlu2 %580 }
 0x23d   : > { %v2410_v24 = vpop.eup %2409  ;;  %v3346_v6 = vmul.f32 0.007874016, %v581_v36 }
 0x23e   : > { %v825_v41 = vmul.f32 %v2410_v24, %v627_v53 }
 0x23f   : > { %2411 = vrsqrt.f32 %v3346_v6  ;;  %vm843_vm1 = vcmp.eq.f32.partialorder %v3346_v6, inf  ;;  %vm845_vm2 = vcmp.eq.f32.partialorder %v3346_v6, 0.0 }
 0x240   : > { %v826_v30 = vmul.f32 %v2410_v24, %v825_v41  ;;  %2413 = vrcp.f32 %v1042_v33 }
 0x242   : > { %v827_v40 = vmul.f32 0.5, %v826_v30 }
 0x244   : > { %v428_v56 = vpop.xlane.xlu2 %427  ;;  %v828_v39 = vsub.f32 1.5, %v827_v40 }
 0x245   : > { %v587_v9 = vpop.xlane.xlu1 %586  ;;  %v2412_v38 = vpop.eup %2411  ;;  %v475_v59 = vmul.f32 %v2902_v13, %v428_v56 }
 0x246   : > { %v3350_v16 = vmul.f32 0.007874016, %v587_v9  ;;  %v583_v55 = vpop.xlane.xlu0 %582  ;;  %v2414_v60 = vpop.eup %2413  ;;  %v837_v58 = vmul.f32 %v2412_v38, %v3346_v6  ;;  %v829_v11 = vmul.f32 %v2410_v24, %v828_v39  ;;  %v846_v24 = vand.u32 2147483648, %v3346_v6 }
 0x247   : > { %v3353_v48 = vmul.f32 0.007874016, %v583_v55  ;;  %v3356_v57 = vsub.f32 %v3208_v63, %v475_v59  ;;  %v1107_v62 = vmul.f32 %v2414_v60, %v3104_v52 }
 0x248   : > { %2415 = vrsqrt.f32 %v3350_v16  ;;  %v830_v28 = vmul.f32 %v829_v11, %v627_v53  ;;  %v838_v2 = vmul.f32 %v2412_v38, %v837_v58  ;;  %vm879_vm5 = vcmp.eq.f32.partialorder %v3350_v16, inf }
 0x249   : > { %2417 = vrsqrt.f32 %v3353_v48  ;;  %v539_v10 = vmul.f32 %v3356_v57, %v3356_v57  ;;  %v1142_v46 = vmul.f32 %v3065_v29, %v1107_v62  ;;  %vm855_vm3 = vcmp.eq.f32.partialorder %v3353_v48, inf }
 0x24a   : > { %v832_v34 = vsel %vm831_vm15, %v627_v53, %v830_v28  ;;  %v839_v42 = vmul.f32 0.5, %v838_v2  ;;  %vm857_vm4 = vcmp.eq.f32.partialorder %v3353_v48, 0.0  ;;  %v858_v60 = vand.u32 2147483648, %v3353_v48 }
 0x24b   : > { %594 = vadd.xlane.f32.xlu0 %v539_v10  ;;  %v835_v14 = vsel %vm833_vm0, %v834_v35, %v832_v34  ;;  %v1178_v30 = vadd.f32 %v3079_v8, %v1142_v46  ;;  %vm881_vm6 = vcmp.eq.f32.partialorder %v3350_v16, 0.0 }
 0x24c   : > { %v430_v63 = vpop.xlane.xlu2 %429  ;;  %v1043_v17 = vadd.f32 1e-06, %v835_v14  ;;  %v840_v43 = vsub.f32 1.5, %v839_v42 }
 0x24d   : > { %v589_v4 = vpop.xlane.xlu1 %588  ;;  %v476_v49 = vmul.f32 %v2902_v13, %v430_v63 }
 0x24e   : > { %v2416_v0 = vpop.eup %2415  ;;  %v3364_v20 = vmul.f32 0.007874016, %v589_v4  ;;  %v585_v7 = vpop.xlane.xlu0 %584  ;;  %2419 = vrcp.f32 %v1043_v17  ;;  %v841_v45 = vmul.f32 %v2412_v38, %v840_v43 }
 0x24f   : > { %v2418_v19 = vpop.eup %2417  ;;  %v873_v52 = vmul.f32 %v2416_v0, %v3350_v16  ;;  %v3368_v50 = vmul.f32 0.007874016, %v585_v7  ;;  %v3372_v47 = vsub.f32 %v3239_v15, %v476_v49 }
 0x250   : > { %v849_v53 = vmul.f32 %v2418_v19, %v3353_v48  ;;  %2421 = vrsqrt.f32 %v3364_v20  ;;  %v1371_v22 = vpop.f32.mrf.mxu0  ;;  %v842_v36 = vmul.f32 %v841_v45, %v3346_v6  ;;  %vm891_vm9 = vcmp.eq.f32.partialorder %v3364_v20, inf }
 0x251   : > { %2423 = vrsqrt.f32 %v3368_v50  ;;  %v1460_v23 = vpop.f32.mrf.mxu1  ;;  %v540_v33 = vmul.f32 %v3372_v47, %v3372_v47  ;;  %v874_v40 = vmul.f32 %v2416_v0, %v873_v52  ;;  %v1372_v38 = vadd.f32 %v1371_v22, %v3256_v61  ;;  %v3408_v52 = vld [vmem:[%s2881_s9 + $0xf8] sm:$0xff] }
 0x252   : > { %v850_v41 = vmul.f32 %v2418_v19, %v849_v53  ;;  %v844_v15 = vsel %vm843_vm1, %v3346_v6, %v842_v36  ;;  %v1461_v14 = vadd.f32 %v1460_v23, %v3258_v27  ;;  %vm867_vm7 = vcmp.eq.f32.partialorder %v3368_v50, inf }
 0x253   : > { %596 = vadd.xlane.f32.xlu0 %v540_v33  ;;  %v847_v56 = vsel %vm845_vm2, %v846_v24, %v844_v15  ;;  %v875_v11 = vmul.f32 0.5, %v874_v40  ;;  %vm869_vm8 = vcmp.eq.f32.partialorder %v3368_v50, 0.0  ;;  %vm893_vm12 = vcmp.eq.f32.partialorder %v3364_v20, 0.0 }
 0x254   : > { %v851_v9 = vmul.f32 0.5, %v850_v41  ;;  %v2420_v39 = vpop.eup %2419  ;;  %v591_v59 = vpop.xlane.xlu2 %590  ;;  %v1044_v58 = vadd.f32 1e-06, %v847_v56  ;;  %v1538_v41 = vmax.f32 %v1461_v14, 0.0 }
 0x255   : > { %v436_v55 = vpop.xlane.xlu1 %435  ;;  %v3390_v6 = vmul.f32 0.007874016, %v591_v59  ;;  %v1108_v35 = vmul.f32 %v2420_v39, %v3154_v51  ;;  %v876_v4 = vsub.f32 1.5, %v875_v11 }
 0x256   : > { %v3388_v28 = vpop.eup %2421  ;;  %v479_v2 = vmul.f32 %v2902_v13, %v436_v55  ;;  %v432_v10 = vpop.xlane.xlu0 %431  ;;  %v852_v62 = vsub.f32 1.5, %v851_v9 }
 0x257   : > { %v2424_v34 = vpop.eup %2423  ;;  %v885_v42 = vmul.f32 %v3388_v28, %v3364_v20  ;;  %v477_v63 = vmul.f32 %v2902_v13, %v432_v10  ;;  %2425 = vrsqrt.f32 %v3390_v6  ;;  %v1143_v49 = vmul.f32 %v3065_v29, %v1108_v35 }
 0x258   : > { %v861_v17 = vmul.f32 %v2424_v34, %v3368_v50  ;;  %v3401_v43 = vsub.f32 %v3273_v21, %v479_v2  ;;  %v1373_v7 = vpop.f32.mrf.mxu0  ;;  %v853_v45 = vmul.f32 %v2418_v19, %v852_v62  ;;  %2427 = vrcp.f32 %v1044_v58 }
 0x259   : > { %v3405_v51 = vsub.f32 %v3276_v3, %v477_v63  ;;  %v1462_v46 = vpop.f32.mrf.mxu1  ;;  %v877_v53 = vmul.f32 %v2416_v0, %v876_v4  ;;  %v1374_v22 = vadd.f32 %v1373_v7, %v3256_v61  ;;  %v1179_v36 = vadd.f32 %v3079_v8, %v1143_v49 }
 0x25a   : > { %v1463_v23 = vadd.f32 %v1462_v46, %v3258_v27  ;;  %v543_v21 = vmul.f32 %v3401_v43, %v3401_v43  ;;  %v1537_v29 = vmax.f32 %v1372_v38, 0.0  ;;  %v854_v33 = vmul.f32 %v853_v45, %v3353_v48 }
 0x25b   : > { %v541_v3 = vmul.f32 %v3405_v51, %v3405_v51  ;;  %v862_v24 = vmul.f32 %v2424_v34, %v861_v17  ;;  %v1539_v19 = vmax.f32 %v1374_v22, 0.0  ;;  %443 = vadd.xlane.f32.xlu0 %v3408_v52  ;;  %v1253_v0 = vpack.c.bf16 %v1179_v36, %v1178_v30 }
 0x25c   : > { %v1540_v15 = vmax.f32 %v1463_v23, 0.0  ;;  %602 = vadd.xlane.f32.xlu2 %v543_v21  ;;  %v3419_v40 = vpop.xlane.xlu2 %592  ;;  %v856_v8 = vsel %vm855_vm3, %v3353_v48, %v854_v33  ;;  %v878_v39 = vmul.f32 %v877_v53, %v3350_v16  ;;  %v886_v38 = vmul.f32 %v3388_v28, %v885_v42  ;;  %v3456_v33 = vld [vmem:[#allocation5] ss:$0 sm:$0xff] }
 0x25d   : > { %598 = vadd.xlane.f32.xlu1 %v541_v3  ;;  %v438_v56 = vpop.xlane.xlu1 %437  ;;  %v863_v9 = vmul.f32 0.5, %v862_v24  ;;  %v2426_v59 = vpop.eup %2425  ;;  %1390 = vmatmul.bf16.gmra.mxu0 %v1253_v0  ;;  %v1595_v30 = vpack.c.bf16 %v1539_v19, %v1537_v29  ;;  %v859_v62 = vsel %vm857_vm4, %v858_v60, %v856_v8  ;;  %v882_v17 = vand.u32 2147483648, %v3350_v16 }
 0x25e   : > { %v480_v55 = vmul.f32 %v2902_v13, %v438_v56  ;;  %v434_v58 = vpop.xlane.xlu0 %433  ;;  %1479 = vmatmul.bf16.gmra.mxu1 %v1253_v0  ;;  %v1596_v11 = vpack.c.bf16 %v1540_v15, %v1538_v41  ;;  %v2428_v2 = vpop.eup %2427  ;;  %v897_v10 = vmul.f32 %v2426_v59, %v3390_v6  ;;  %v1045_v14 = vadd.f32 1e-06, %v859_v62 }
 0x25f   : > { %v478_v35 = vmul.f32 %v2902_v13, %v434_v58  ;;  %1743 = vmatmul.bf16.gmra.mxu2 %v1595_v30  ;;  %v864_v63 = vsub.f32 1.5, %v863_v9  ;;  %v887_v48 = vmul.f32 0.5, %v886_v38  ;;  %v880_v49 = vsel %vm879_vm5, %v3350_v16, %v878_v39  ;;  %v3466_v9 = vld [vmem:[%s3805_s6] ss:$0 sm:$0xff] }
 0x260   : > { %v3433_v42 = vsub.f32 %v3306_v1, %v480_v55  ;;  %1832 = vmatmul.bf16.gmra.mxu3 %v1596_v11  ;;  %2429 = vrcp.f32 %v1045_v14  ;;  %v870_v53 = vand.u32 2147483648, %v3368_v50  ;;  %v898_v22 = vmul.f32 %v2426_v59, %v897_v10 }
 0x261   : > { %v3437_v4 = vsub.f32 %v3311_v5, %v478_v35  ;;  %v865_v1 = vmul.f32 %v2424_v34, %v864_v63  ;;  %v1109_v5 = vmul.f32 %v2428_v2, %v3174_v44  ;;  %v883_v34 = vsel %vm881_vm6, %v882_v17, %v880_v49  ;;  %v3477_v2 = vld [vmem:[%s3801_s2] ss:$0 sm:$0xff] }
 0x262   : > { %v544_v60 = vmul.f32 %v3433_v42, %v3433_v42  ;;  %v1376_v7 = vpop.f32.mrf.mxu0  ;;  %v1465_v46 = vpop.f32.mrf.mxu1  ;;  %v888_v36 = vsub.f32 1.5, %v887_v48  ;;  %v899_v29 = vmul.f32 0.5, %v898_v22  ;;  %v1047_v56 = vadd.f32 1e-06, %v883_v34 }
 0x263   : > { %v542_v45 = vmul.f32 %v3437_v4, %v3437_v4  ;;  %v866_v23 = vmul.f32 %v865_v1, %v3368_v50  ;;  %v1144_v24 = vmul.f32 %v3456_v33, %v1109_v5  ;;  %v1377_v8 = vadd.f32 %v1376_v7, %v3256_v61 }
 0x264   : > { %604 = vadd.xlane.f32.xlu0 %v544_v60  ;;  %v440_v21 = vpop.xlane.xlu2 %439  ;;  %v900_v19 = vsub.f32 1.5, %v899_v29  ;;  %v889_v39 = vmul.f32 %v3388_v28, %v888_v36  ;;  %v1466_v55 = vadd.f32 %v1465_v46, %v3258_v27  ;;  %vm903_vm10 = vcmp.eq.f32.partialorder %v3390_v6, inf  ;;  %v2481_v29 = vld [vmem:[%s2881_s9] sm:$0xff] }
 0x265   : > { %600 = vadd.xlane.f32.xlu1 %v542_v45  ;;  %v481_v3 = vmul.f32 %v2902_v13, %v440_v21  ;;  %v868_v44 = vsel %vm867_vm7, %v3368_v50, %v866_v23  ;;  %v1541_v14 = vmax.f32 %v1377_v8, 0.0  ;;  %vm905_vm11 = vcmp.eq.f32.partialorder %v3390_v6, 0.0 }
 0x266   : > { %v871_v41 = vsel %vm869_vm8, %v870_v53, %v868_v44  ;;  %v2430_v15 = vpop.eup %2429  ;;  %v901_v38 = vmul.f32 %v2426_v59, %v900_v19  ;;  %v890_v60 = vmul.f32 %v889_v39, %v3364_v20  ;;  %v1542_v1 = vmax.f32 %v1466_v55, 0.0 }
 0x267   : > { %v3460_v0 = vsub.f32 %v3323_v18, %v481_v3  ;;  %v1046_v16 = vadd.f32 1e-06, %v871_v41  ;;  %v1110_v50 = vmul.f32 %v2430_v15, %v3205_v54  ;;  %v1180_v54 = vadd.f32 %v3477_v2, %v1144_v24 }
 0x268   : > { %v902_v62 = vmul.f32 %v901_v38, %v3390_v6  ;;  %v906_v53 = vand.u32 2147483648, %v3390_v6  ;;  %v894_v44 = vand.u32 2147483648, %v3364_v20 }
 0x269   : > { %v545_v18 = vmul.f32 %v3460_v0, %v3460_v0  ;;  %2431 = vrcp.f32 %v1046_v16  ;;  %v1145_v11 = vmul.f32 %v3456_v33, %v1110_v50  ;;  %v1729_v10 = vpop.f32.mrf.mxu2  ;;  %v1818_v35 = vpop.f32.mrf.mxu3 }
 0x26a   : > { %v1378_v58 = vpop.f32.mrf.mxu0  ;;  %v1467_v30 = vpop.f32.mrf.mxu1  ;;  %2433 = vrcp.f32 %v1047_v56  ;;  %v1730_v63 = vadd.f32 %v3466_v9, %v1729_v10  ;;  %v904_v36 = vsel %vm903_vm10, %v3390_v6, %v902_v62 }
 0x26b   : > { %v1379_v28 = vadd.f32 %v1378_v58, %v3256_v61  ;;  %v1468_v59 = vadd.f32 %v1467_v30, %v3258_v27  ;;  %v1181_v48 = vadd.f32 %v3477_v2, %v1145_v11  ;;  %v907_v56 = vsel %vm905_vm11, %v906_v53, %v904_v36  ;;  %v2482_v11 = vld [vmem:[%s2881_s9 + $0x8] sm:$0xff] }
 0x26c   : > { %v442_v17 = vpop.xlane.xlu2 %441  ;;  %v1819_v45 = vadd.f32 %v1818_v35, %v1730_v63  ;;  %v1049_v55 = vadd.f32 1e-06, %v907_v56  ;;  %v2484_v56 = vld [vmem:[%s2881_s9 + $0x18] sm:$0xff] }
 0x26d   : > { %606 = vadd.xlane.f32.xlu1 %v545_v18  ;;  %v1543_v49 = vmax.f32 %v1379_v28, 0.0  ;;  %v1544_v7 = vmax.f32 %v1468_v59, 0.0  ;;  %v482_v46 = vmul.f32 %v2902_v13, %v442_v17  ;;  %v1254_v5 = vpack.c.bf16 %v1181_v48, %v1180_v54 }
 0x26e   : > { %v1898_v3 = vadd.f32 %v2481_v29, %v1819_v45  ;;  %2435 = vrcp.f32 %v1049_v55 }
 0x26f   : > { %v2432_v22 = vpop.eup %2431  ;;  %v3492_v23 = vsub.f32 %v3332_v12, %v482_v46  ;;  %v1597_v21 = vpack.c.bf16 %v1543_v49, %v1541_v14  ;;  %v1598_v34 = vpack.c.bf16 %v1544_v7, %v1542_v1  ;;  %1395 = vmatmul.bf16.gmra.mxu0 %v1254_v5  ;;  %1484 = vmatmul.bf16.gmra.mxu1 %v1254_v5 }
 0x270   : > { %v2434_v24 = vpop.eup %2433  ;;  %v892_v12 = vsel %vm891_vm9, %v3364_v20, %v890_v60  ;;  %1930 = vst [vmem:[%s3507_s11] sm:$0xff] %v1898_v3  ;;  %v1111_v16 = vmul.f32 %v2432_v22, %v3236_v37 }
 0x271   : > { %1748 = vmatmul.bf16.gmra.mxu2 %v1597_v21  ;;  %1837 = vmatmul.bf16.gmra.mxu3 %v1598_v34  ;;  %v546_v41 = vmul.f32 %v3492_v23, %v3492_v23  ;;  %v1731_v8 = vpop.f32.mrf.mxu2  ;;  %v1820_v50 = vpop.f32.mrf.mxu3  ;;  %v1112_v20 = vmul.f32 %v2434_v24, %v3201_v25  ;;  %v895_v38 = vsel %vm893_vm12, %v894_v44, %v892_v12  ;;  %v2483_v21 = vld [vmem:[%s2881_s9 + $0x10] sm:$0xff] }
 0x272   : > { %v1381_v19 = vpop.f32.mrf.mxu0  ;;  %v1470_v15 = vpop.f32.mrf.mxu1  ;;  %v1732_v39 = vadd.f32 %v3466_v9, %v1731_v8  ;;  %v1146_v58 = vmul.f32 %v3456_v33, %v1111_v16  ;;  %v1048_v30 = vadd.f32 1e-06, %v895_v38 }
 0x273   : > { %608 = vadd.xlane.f32.xlu2 %v546_v41  ;;  %v1147_v37 = vmul.f32 %v3456_v33, %v1112_v20  ;;  %v1382_v6 = vadd.f32 %v1381_v19, %v3256_v61  ;;  %v1471_v28 = vadd.f32 %v1470_v15, %v3258_v27 }
 0x274   : > { %v1821_v18 = vadd.f32 %v1820_v50, %v1732_v39  ;;  %v1182_v25 = vadd.f32 %v3477_v2, %v1146_v58  ;;  %2437 = vrcp.f32 %v1048_v30  ;;  %v2436_v5 = vpop.eup %2435 }
 0x275   : > { %v1183_v48 = vadd.f32 %v3477_v2, %v1147_v37  ;;  %v1545_v60 = vmax.f32 %v1382_v6, 0.0  ;;  %v1546_v1 = vmax.f32 %v1471_v28, 0.0  ;;  %v1114_v44 = vmul.f32 %v2436_v5, %v3267_v31 }
 0x276   : > { %v1899_v54 = vadd.f32 %v2482_v11, %v1821_v18 }
 0x277   : > { %v1255_v45 = vpack.c.bf16 %v1183_v48, %v1182_v25  ;;  %v1149_v16 = vmul.f32 %v3456_v33, %v1114_v44 }
 0x278   : > { %1931 = vst [vmem:[%s3507_s11 + $0x8] sm:$0xff] %v1899_v54 }
 0x279   : > { %v1734_v14 = vpop.f32.mrf.mxu2  ;;  %v1823_v63 = vpop.f32.mrf.mxu3  ;;  %v1185_v55 = vadd.f32 %v3477_v2, %v1149_v16 }
 0x27a   : > { %v1383_v59 = vpop.f32.mrf.mxu0  ;;  %v1472_v10 = vpop.f32.mrf.mxu1  ;;  %v1735_v17 = vadd.f32 %v3466_v9, %v1734_v14  ;;  %v2485_v14 = vld [vmem:[%s2881_s9 + $0x20] sm:$0xff] }
 0x27b   : > { %v1384_v35 = vadd.f32 %v1383_v59, %v3256_v61  ;;  %v1473_v62 = vadd.f32 %v1472_v10, %v3258_v27  ;;  %v2438_v36 = vpop.eup %2437 }
 0x27c   : > { %v1824_v46 = vadd.f32 %v1823_v63, %v1735_v17  ;;  %v1113_v19 = vmul.f32 %v2438_v36, %v3230_v26 }
 0x27d   : > { %v1547_v49 = vmax.f32 %v1384_v35, 0.0  ;;  %v1548_v7 = vmax.f32 %v1473_v62, 0.0 }
 0x27e   : > { %v1900_v34 = vadd.f32 %v2483_v21, %v1824_v46  ;;  %v1148_v50 = vmul.f32 %v3456_v33, %v1113_v19  ;;  %v634_v46 = vmul.f32 0.007874016, %v3419_v40 }
 0x27f   : > { %v1599_v53 = vpack.c.bf16 %v1547_v49, %v1545_v60  ;;  %v1600_v22 = vpack.c.bf16 %v1548_v7, %v1546_v1  ;;  %1400 = vmatmul.bf16.gmra.mxu0 %v1255_v45  ;;  %1489 = vmatmul.bf16.gmra.mxu1 %v1255_v45  ;;  %v2486_v49 = vld [vmem:[%s2881_s9 + $0x28] sm:$0xff] }
 0x280   : > { %1932 = vst [vmem:[%s3507_s11 + $0x10] sm:$0xff] %v1900_v34  ;;  %v1184_v54 = vadd.f32 %v3477_v2, %v1148_v50  ;;  %2439 = vrsqrt.f32 %v634_v46  ;;  %vm915_vm13 = vcmp.eq.f32.partialorder %v634_v46, inf  ;;  %v918_v44 = vand.u32 2147483648, %v634_v46 }
 0x281   : > { %1753 = vmatmul.bf16.gmra.mxu2 %v1599_v53  ;;  %1842 = vmatmul.bf16.gmra.mxu3 %v1600_v22  ;;  %v1736_v24 = vpop.f32.mrf.mxu2  ;;  %v1825_v41 = vpop.f32.mrf.mxu3  ;;  %vm917_vm14 = vcmp.eq.f32.partialorder %v634_v46, 0.0 }
 0x282   : > { %v1386_v29 = vpop.f32.mrf.mxu0  ;;  %v1475_v3 = vpop.f32.mrf.mxu1  ;;  %v1737_v12 = vadd.f32 %v3466_v9, %v1736_v24  ;;  %v1256_v25 = vpack.c.bf16 %v1185_v55, %v1184_v54 }
 0x283   : > { %v1387_v39 = vadd.f32 %v1386_v29, %v3256_v61  ;;  %v1476_v20 = vadd.f32 %v1475_v3, %v3258_v27 }
 0x284   : > { %v1826_v15 = vadd.f32 %v1825_v41, %v1737_v12 }
 0x285   : > { %v1549_v37 = vmax.f32 %v1387_v39, 0.0  ;;  %v1550_v6 = vmax.f32 %v1476_v20, 0.0 }
 0x286   : > { %v1901_v8 = vadd.f32 %v2484_v56, %v1826_v15  ;;  %v2440_v45 = vpop.eup %2439 }
 0x287   : > { %v909_v5 = vmul.f32 %v2440_v45, %v634_v46 }
 0x288   : > { %1933 = vst [vmem:[%s3507_s11 + $0x18] sm:$0xff] %v1901_v8 }
 0x289   : > { %v1739_v58 = vpop.f32.mrf.mxu2  ;;  %v1828_v30 = vpop.f32.mrf.mxu3  ;;  %v910_v53 = vmul.f32 %v2440_v45, %v909_v5 }
 0x28a   : > { %v1388_v38 = vpop.f32.mrf.mxu0  ;;  %v1477_v31 = vpop.f32.mrf.mxu1  ;;  %v1740_v11 = vadd.f32 %v3466_v9, %v1739_v58 }
 0x28b   : > { %v1389_v18 = vadd.f32 %v1388_v38, %v3256_v61  ;;  %v1478_v26 = vadd.f32 %v1477_v31, %v3258_v27  ;;  %v911_v22 = vmul.f32 0.5, %v910_v53 }
 0x28c   : > { %v1829_v10 = vadd.f32 %v1828_v30, %v1740_v11 }
 0x28d   : > { %v1551_v28 = vmax.f32 %v1389_v18, 0.0  ;;  %v1552_v59 = vmax.f32 %v1478_v26, 0.0  ;;  %v912_v21 = vsub.f32 1.5, %v911_v22 }
 0x28e   : > { %v1902_v63 = vadd.f32 %v2485_v14, %v1829_v10 }
 0x28f   : > { %v1601_v35 = vpack.c.bf16 %v1551_v28, %v1549_v37  ;;  %v1602_v62 = vpack.c.bf16 %v1552_v59, %v1550_v6  ;;  %1405 = vmatmul.bf16.gmra.mxu0 %v1256_v25  ;;  %1494 = vmatmul.bf16.gmra.mxu1 %v1256_v25  ;;  %v913_v34 = vmul.f32 %v2440_v45, %v912_v21 }
 0x290   : > { %1934 = vst [vmem:[%s3507_s11 + $0x20] sm:$0xff] %v1902_v63 }
 0x291   : > { %1758 = vmatmul.bf16.gmra.mxu2 %v1601_v35  ;;  %1847 = vmatmul.bf16.gmra.mxu3 %v1602_v62  ;;  %v1741_v17 = vpop.f32.mrf.mxu2  ;;  %v1830_v60 = vpop.f32.mrf.mxu3  ;;  %v914_v3 = vmul.f32 %v913_v34, %v634_v46 }
 0x292   : > { %v1742_v48 = vadd.f32 %v3466_v9, %v1741_v17 }
 0x293   : > { %v916_v24 = vsel %vm915_vm13, %v634_v46, %v914_v3 }
 0x294   : > { %v1831_v1 = vadd.f32 %v1830_v60, %v1742_v48  ;;  %v919_v15 = vsel %vm917_vm14, %v918_v44, %v916_v24 }
 0x295   : > { %v1050_v56 = vadd.f32 1e-06, %v919_v15 }
 0x296   : > { %v1903_v7 = vadd.f32 %v2486_v49, %v1831_v1 }
 0x298   : > { %1935 = vst [vmem:[%s3507_s11 + $0x28] sm:$0xff] %v1903_v7 }
 0x2be   : > { %v595_v36 = vpop.xlane.xlu0 %594 }
 0x2bf   : > { %v635_v29 = vmul.f32 0.007874016, %v595_v36 }
 0x2c1   : > { %2441 = vrsqrt.f32 %v635_v29  ;;  %vm927_vm15 = vcmp.eq.f32.partialorder %v635_v29, inf  ;;  %v930_v28 = vand.u32 2147483648, %v635_v29  ;;  %vm929_vm0 = vcmp.eq.f32.partialorder %v635_v29, 0.0 }
 0x2c6   : > { %v597_v41 = vpop.xlane.xlu0 %596 }
 0x2c7   : > { %v2442_v12 = vpop.eup %2441  ;;  %v636_v19 = vmul.f32 0.007874016, %v597_v41 }
 0x2c8   : > { %v921_v40 = vmul.f32 %v2442_v12, %v635_v29 }
 0x2c9   : > { %2443 = vrsqrt.f32 %v636_v19  ;;  %vm939_vm1 = vcmp.eq.f32.partialorder %v636_v19, inf  ;;  %v942_v34 = vand.u32 2147483648, %v636_v19  ;;  %vm941_vm2 = vcmp.eq.f32.partialorder %v636_v19, 0.0 }
 0x2ca   : > { %v922_v16 = vmul.f32 %v2442_v12, %v921_v40  ;;  %2445 = vrcp.f32 %v1050_v56 }
 0x2cc   : > { %v923_v8 = vmul.f32 0.5, %v922_v16 }
 0x2ce   : > { %v444_v39 = vpop.xlane.xlu0 %443  ;;  %v924_v20 = vsub.f32 1.5, %v923_v8 }
 0x2cf   : > { %v603_v50 = vpop.xlane.xlu2 %602  ;;  %v2444_v38 = vpop.eup %2443  ;;  %v483_v18 = vmul.f32 %v2902_v13, %v444_v39 }
 0x2d0   : > { %v3548_v31 = vmul.f32 0.007874016, %v603_v50  ;;  %v599_v55 = vpop.xlane.xlu1 %598  ;;  %v933_v26 = vmul.f32 %v2444_v38, %v636_v19  ;;  %v925_v30 = vmul.f32 %v2442_v12, %v924_v20  ;;  %v2446_v59 = vpop.eup %2445 }
 0x2d1   : > { %v3551_v58 = vmul.f32 0.007874016, %v599_v55  ;;  %v3555_v11 = vsub.f32 %v3408_v52, %v483_v18  ;;  %v1115_v48 = vmul.f32 %v2446_v59, %v3302_v32 }
 0x2d2   : > { %2447 = vrsqrt.f32 %v3548_v31  ;;  %v934_v54 = vmul.f32 %v2444_v38, %v933_v26  ;;  %v926_v37 = vmul.f32 %v925_v30, %v635_v29  ;;  %vm975_vm5 = vcmp.eq.f32.partialorder %v3548_v31, inf }
 0x2d3   : > { %2449 = vrsqrt.f32 %v3551_v58  ;;  %v547_v6 = vmul.f32 %v3555_v11, %v3555_v11  ;;  %v1150_v32 = vmul.f32 %v3456_v33, %v1115_v48  ;;  %vm951_vm3 = vcmp.eq.f32.partialorder %v3551_v58, inf }
 0x2d4   : > { %v935_v13 = vmul.f32 0.5, %v934_v54  ;;  %v928_v10 = vsel %vm927_vm15, %v635_v29, %v926_v37  ;;  %vm953_vm4 = vcmp.eq.f32.partialorder %v3551_v58, 0.0  ;;  %v954_v26 = vand.u32 2147483648, %v3551_v58 }
 0x2d5   : > { %610 = vadd.xlane.f32.xlu0 %v547_v6  ;;  %v931_v25 = vsel %vm929_vm0, %v930_v28, %v928_v10  ;;  %v1186_v8 = vadd.f32 %v3477_v2, %v1150_v32  ;;  %vm977_vm6 = vcmp.eq.f32.partialorder %v3548_v31, 0.0 }
 0x2d6   : > { %v936_v35 = vsub.f32 1.5, %v935_v13  ;;  %v1051_v14 = vadd.f32 1e-06, %v931_v25 }
 0x2d7   : > { %v605_v62 = vpop.xlane.xlu0 %604 }
 0x2d8   : > { %v2448_v52 = vpop.eup %2447  ;;  %v601_v63 = vpop.xlane.xlu1 %600  ;;  %v3560_v17 = vmul.f32 0.007874016, %v605_v62  ;;  %2451 = vrcp.f32 %v1051_v14  ;;  %v937_v7 = vmul.f32 %v2444_v38, %v936_v35 }
 0x2d9   : > { %v2450_v60 = vpop.eup %2449  ;;  %v969_v1 = vmul.f32 %v2448_v52, %v3548_v31  ;;  %v3564_v49 = vmul.f32 0.007874016, %v601_v63 }
 0x2da   : > { %v945_v46 = vmul.f32 %v2450_v60, %v3551_v58  ;;  %2453 = vrsqrt.f32 %v3560_v17  ;;  %v1391_v5 = vpop.f32.mrf.mxu0  ;;  %v938_v22 = vmul.f32 %v937_v7, %v636_v19  ;;  %vm987_vm9 = vcmp.eq.f32.partialorder %v3560_v17, inf }
 0x2db   : > { %v970_v45 = vmul.f32 %v2448_v52, %v969_v1  ;;  %2455 = vrsqrt.f32 %v3564_v49  ;;  %v1480_v53 = vpop.f32.mrf.mxu1  ;;  %v1392_v12 = vadd.f32 %v1391_v5, %v3256_v61  ;;  %vm963_vm7 = vcmp.eq.f32.partialorder %v3564_v49, inf }
 0x2dc   : > { %v946_v21 = vmul.f32 %v2450_v60, %v945_v46  ;;  %v940_v29 = vsel %vm939_vm1, %v636_v19, %v938_v22  ;;  %v1481_v39 = vadd.f32 %v1480_v53, %v3258_v27  ;;  %vm965_vm8 = vcmp.eq.f32.partialorder %v3564_v49, 0.0 }
 0x2dd   : > { %v971_v36 = vmul.f32 0.5, %v970_v45  ;;  %v943_v44 = vsel %vm941_vm2, %v942_v34, %v940_v29  ;;  %v1553_v30 = vmax.f32 %v1392_v12, 0.0  ;;  %v2487_v34 = vld [vmem:[%s2881_s9 + $0x30] sm:$0xff]  ;;  %vm989_vm12 = vcmp.eq.f32.partialorder %v3560_v17, 0.0 }
 0x2de   : > { %v947_v3 = vmul.f32 0.5, %v946_v21  ;;  %v2452_v24 = vpop.eup %2451  ;;  %v1052_v20 = vadd.f32 1e-06, %v943_v44  ;;  %v1554_v62 = vmax.f32 %v1481_v39, 0.0 }
 0x2df   : > { %v972_v41 = vsub.f32 1.5, %v971_v36  ;;  %v1116_v56 = vmul.f32 %v2452_v24, %v3356_v57 }
 0x2e0   : > { %v3571_v15 = vpop.eup %2453  ;;  %v948_v40 = vsub.f32 1.5, %v947_v3  ;;  %v607_v16 = vpop.xlane.xlu1 %606 }
 0x2e1   : > { %v2456_v50 = vpop.eup %2455  ;;  %v3577_v19 = vmul.f32 0.007874016, %v607_v16  ;;  %v1151_v55 = vmul.f32 %v3456_v33, %v1116_v56  ;;  %v981_v57 = vmul.f32 %v3571_v15, %v3560_v17  ;;  %v973_v6 = vmul.f32 %v2448_v52, %v972_v41 }
 0x2e2   : > { %v957_v38 = vmul.f32 %v2456_v50, %v3564_v49  ;;  %v949_v18 = vmul.f32 %v2450_v60, %v948_v40  ;;  %v1393_v54 = vpop.f32.mrf.mxu0  ;;  %v1744_v10 = vpop.f32.mrf.mxu2  ;;  %v978_v41 = vand.u32 2147483648, %v3548_v31  ;;  %v966_v16 = vand.u32 2147483648, %v3564_v49 }
 0x2e3   : > { %2457 = vrsqrt.f32 %v3577_v19  ;;  %v1482_v37 = vpop.f32.mrf.mxu1  ;;  %v1394_v59 = vadd.f32 %v1393_v54, %v3256_v61  ;;  %v1833_v25 = vpop.f32.mrf.mxu3  ;;  %v1187_v35 = vadd.f32 %v3477_v2, %v1151_v55  ;;  %v1745_v14 = vadd.f32 %v3466_v9, %v1744_v10 }
 0x2e4   : > { %v958_v28 = vmul.f32 %v2456_v50, %v957_v38  ;;  %v1483_v13 = vadd.f32 %v1482_v37, %v3258_v27  ;;  %v950_v63 = vmul.f32 %v949_v18, %v3551_v58  ;;  %2459 = vrcp.f32 %v1052_v20 }
 0x2e5   : > { %v1555_v60 = vmax.f32 %v1394_v59, 0.0  ;;  %v1257_v52 = vpack.c.bf16 %v1187_v35, %v1186_v8  ;;  %v982_v7 = vmul.f32 %v3571_v15, %v981_v57  ;;  %v1834_v46 = vadd.f32 %v1833_v25, %v1745_v14 }
 0x2e6   : > { %v959_v48 = vmul.f32 0.5, %v958_v28  ;;  %v1556_v1 = vmax.f32 %v1483_v13, 0.0  ;;  %v952_v45 = vsel %vm951_vm3, %v3551_v58, %v950_v63  ;;  %v974_v5 = vmul.f32 %v973_v6, %v3548_v31  ;;  %v2488_v13 = vld [vmem:[%s2881_s9 + $0x38] sm:$0xff] }
 0x2e7   : > { %1410 = vmatmul.bf16.gmra.mxu0 %v1257_v52  ;;  %1499 = vmatmul.bf16.gmra.mxu1 %v1257_v52  ;;  %v1603_v22 = vpack.c.bf16 %v1555_v60, %v1553_v30  ;;  %v1904_v36 = vadd.f32 %v2487_v34, %v1834_v46  ;;  %v955_v29 = vsel %vm953_vm4, %v954_v26, %v952_v45  ;;  %v983_v40 = vmul.f32 0.5, %v982_v7 }
 0x2e8   : > { %v960_v53 = vsub.f32 1.5, %v959_v48  ;;  %v1604_v21 = vpack.c.bf16 %v1556_v1, %v1554_v62  ;;  %v1053_v44 = vadd.f32 1e-06, %v955_v29  ;;  %v976_v58 = vsel %vm975_vm5, %v3548_v31, %v974_v5 }
 0x2e9   : > { %v2458_v32 = vpop.eup %2457  ;;  %1763 = vmatmul.bf16.gmra.mxu2 %v1603_v22  ;;  %1936 = vst [vmem:[%s3507_s11 + $0x30] sm:$0xff] %v1904_v36  ;;  %v979_v30 = vsel %vm977_vm6, %v978_v41, %v976_v58  ;;  %v984_v54 = vsub.f32 1.5, %v983_v40  ;;  %vm999_vm10 = vcmp.eq.f32.partialorder %v3577_v19, inf  ;;  %vm1001_vm11 = vcmp.eq.f32.partialorder %v3577_v19, 0.0 }
 0x2ea   : > { %v993_v3 = vmul.f32 %v2458_v32, %v3577_v19  ;;  %1852 = vmatmul.bf16.gmra.mxu3 %v1604_v21  ;;  %v961_v24 = vmul.f32 %v2456_v50, %v960_v53  ;;  %v2460_v12 = vpop.eup %2459  ;;  %v1746_v8 = vpop.f32.mrf.mxu2  ;;  %2461 = vrcp.f32 %v1053_v44  ;;  %v1055_v25 = vadd.f32 1e-06, %v979_v30 }
 0x2eb   : > { %v1835_v39 = vpop.f32.mrf.mxu3  ;;  %v1747_v20 = vadd.f32 %v3466_v9, %v1746_v8  ;;  %v1117_v26 = vmul.f32 %v2460_v12, %v3372_v47  ;;  %v1002_v36 = vand.u32 2147483648, %v3577_v19  ;;  %v2489_v12 = vld [vmem:[%s2881_s9 + $0x40] sm:$0xff] }
 0x2ec   : > { %v994_v56 = vmul.f32 %v2458_v32, %v993_v3  ;;  %v962_v50 = vmul.f32 %v961_v24, %v3564_v49  ;;  %v1396_v55 = vpop.f32.mrf.mxu0  ;;  %v1485_v18 = vpop.f32.mrf.mxu1 }
 0x2ed   : > { %v1836_v37 = vadd.f32 %v1835_v39, %v1747_v20  ;;  %v1152_v14 = vmul.f32 %v3456_v33, %v1117_v26  ;;  %v1397_v31 = vadd.f32 %v1396_v55, %v3256_v61  ;;  %v1486_v63 = vadd.f32 %v1485_v18, %v3258_v27 }
 0x2ee   : > { %v995_v38 = vmul.f32 0.5, %v994_v56  ;;  %v964_v57 = vsel %vm963_vm7, %v3564_v49, %v962_v50  ;;  %v985_v49 = vmul.f32 %v3571_v15, %v984_v54 }
 0x2ef   : > { %v967_v6 = vsel %vm965_vm8, %v966_v16, %v964_v57  ;;  %v1905_v10 = vadd.f32 %v2488_v13, %v1836_v37  ;;  %v1188_v45 = vadd.f32 %v3477_v2, %v1152_v14  ;;  %v1557_v21 = vmax.f32 %v1397_v31, 0.0 }
 0x2f0   : > { %v996_v28 = vsub.f32 1.5, %v995_v38  ;;  %v1054_v59 = vadd.f32 1e-06, %v967_v6  ;;  %v2462_v35 = vpop.eup %2461  ;;  %v986_v22 = vmul.f32 %v985_v49, %v3560_v17  ;;  %v990_v16 = vand.u32 2147483648, %v3560_v17 }
 0x2f1   : > { %1937 = vst [vmem:[%s3507_s11 + $0x38] sm:$0xff] %v1905_v10  ;;  %v1118_v47 = vmul.f32 %v2462_v35, %v3405_v51 }
 0x2f2   : > { %v997_v62 = vmul.f32 %v2458_v32, %v996_v28  ;;  %2463 = vrcp.f32 %v1054_v59  ;;  %v1558_v32 = vmax.f32 %v1486_v63, 0.0  ;;  %v988_v39 = vsel %vm987_vm9, %v3560_v17, %v986_v22  ;;  %v2490_v28 = vld [vmem:[%s2881_s9 + $0x48] sm:$0xff] }
 0x2f3   : > { %v1153_v52 = vmul.f32 %v3456_v33, %v1118_v47  ;;  %2465 = vrcp.f32 %v1055_v25  ;;  %v991_v54 = vsel %vm989_vm12, %v990_v16, %v988_v39 }
 0x2f4   : > { %v998_v48 = vmul.f32 %v997_v62, %v3577_v19  ;;  %v1749_v60 = vpop.f32.mrf.mxu2  ;;  %v1838_v1 = vpop.f32.mrf.mxu3 }
 0x2f5   : > { %v1398_v7 = vpop.f32.mrf.mxu0  ;;  %v1487_v46 = vpop.f32.mrf.mxu1  ;;  %v1750_v51 = vadd.f32 %v3466_v9, %v1749_v60  ;;  %v1189_v53 = vadd.f32 %v3477_v2, %v1153_v52 }
 0x2f6   : > { %v1399_v15 = vadd.f32 %v1398_v7, %v3256_v61  ;;  %v1488_v5 = vadd.f32 %v1487_v46, %v3258_v27  ;;  %v1000_v41 = vsel %vm999_vm10, %v3577_v19, %v998_v48 }
 0x2f7   : > { %v1839_v34 = vadd.f32 %v1838_v1, %v1750_v51  ;;  %v1258_v24 = vpack.c.bf16 %v1189_v53, %v1188_v45  ;;  %v1003_v20 = vsel %vm1001_vm11, %v1002_v36, %v1000_v41  ;;  %v2491_v45 = vld [vmem:[%s2881_s9 + $0x50] sm:$0xff] }
 0x2f8   : > { %v2464_v29 = vpop.eup %2463  ;;  %v1559_v3 = vmax.f32 %v1399_v15, 0.0  ;;  %v1560_v44 = vmax.f32 %v1488_v5, 0.0  ;;  %v1057_v17 = vadd.f32 1e-06, %v1003_v20 }
 0x2f9   : > { %v1906_v40 = vadd.f32 %v2489_v12, %v1839_v34  ;;  %v2466_v58 = vpop.eup %2465  ;;  %1415 = vmatmul.bf16.gmra.mxu0 %v1258_v24  ;;  %1504 = vmatmul.bf16.gmra.mxu1 %v1258_v24  ;;  %v1119_v50 = vmul.f32 %v2464_v29, %v3437_v4  ;;  %v1056_v4 = vadd.f32 1e-06, %v991_v54  ;;  %v2492_v12 = vld [vmem:[%s2881_s9 + $0x58] sm:$0xff] }
 0x2fa   : > { %v1605_v56 = vpack.c.bf16 %v1559_v3, %v1557_v21  ;;  %v1606_v8 = vpack.c.bf16 %v1560_v44, %v1558_v32  ;;  %v1120_v30 = vmul.f32 %v2466_v58, %v3401_v43  ;;  %2467 = vrcp.f32 %v1057_v17 }
 0x2fb   : > { %1938 = vst [vmem:[%s3507_s11 + $0x40] sm:$0xff] %v1906_v40  ;;  %v1154_v6 = vmul.f32 %v3456_v33, %v1119_v50  ;;  %2469 = vrcp.f32 %v1056_v4 }
 0x2fc   : > { %1768 = vmatmul.bf16.gmra.mxu2 %v1605_v56  ;;  %1857 = vmatmul.bf16.gmra.mxu3 %v1606_v8  ;;  %v1751_v38 = vpop.f32.mrf.mxu2  ;;  %v1840_v55 = vpop.f32.mrf.mxu3  ;;  %v1155_v59 = vmul.f32 %v3456_v33, %v1120_v30 }
 0x2fd   : > { %v1401_v18 = vpop.f32.mrf.mxu0  ;;  %v1490_v26 = vpop.f32.mrf.mxu1  ;;  %v1752_v57 = vadd.f32 %v3466_v9, %v1751_v38  ;;  %v1190_v13 = vadd.f32 %v3477_v2, %v1154_v6  ;;  %v2493_v6 = vld [vmem:[%s2881_s9 + $0x60] sm:$0xff] }
 0x2fe   : > { %v1402_v10 = vadd.f32 %v1401_v18, %v3256_v61  ;;  %v1491_v25 = vadd.f32 %v1490_v26, %v3258_v27  ;;  %v1191_v49 = vadd.f32 %v3477_v2, %v1155_v59 }
 0x2ff   : > { %v1841_v37 = vadd.f32 %v1840_v55, %v1752_v57 }
 0x300   : > { %v1259_v60 = vpack.c.bf16 %v1191_v49, %v1190_v13  ;;  %v2468_v1 = vpop.eup %2467  ;;  %v1561_v52 = vmax.f32 %v1402_v10, 0.0  ;;  %v1562_v7 = vmax.f32 %v1491_v25, 0.0 }
 0x301   : > { %v1907_v19 = vadd.f32 %v2490_v28, %v1841_v37  ;;  %v2470_v5 = vpop.eup %2469  ;;  %v1122_v21 = vmul.f32 %v2468_v1, %v3460_v0 }
 0x302   : > { %v1121_v44 = vmul.f32 %v2470_v5, %v3433_v42 }
 0x303   : > { %1939 = vst [vmem:[%s3507_s11 + $0x48] sm:$0xff] %v1907_v19  ;;  %v1157_v41 = vmul.f32 %v3456_v33, %v1122_v21 }
 0x304   : > { %v1754_v35 = vpop.f32.mrf.mxu2  ;;  %v1843_v43 = vpop.f32.mrf.mxu3  ;;  %v1156_v16 = vmul.f32 %v3456_v33, %v1121_v44 }
 0x305   : > { %v1403_v62 = vpop.f32.mrf.mxu0  ;;  %v1492_v14 = vpop.f32.mrf.mxu1  ;;  %v1755_v47 = vadd.f32 %v3466_v9, %v1754_v35  ;;  %v1193_v0 = vadd.f32 %v3477_v2, %v1157_v41  ;;  %v2494_v35 = vld [vmem:[%s2881_s9 + $0x68] sm:$0xff] }
 0x306   : > { %v1404_v31 = vadd.f32 %v1403_v62, %v3256_v61  ;;  %v1493_v63 = vadd.f32 %v1492_v14, %v3258_v27  ;;  %v1192_v38 = vadd.f32 %v3477_v2, %v1156_v16  ;;  %v609_v62 = vpop.xlane.xlu2 %608 }
 0x307   : > { %v1844_v48 = vadd.f32 %v1843_v43, %v1755_v47  ;;  %v642_v14 = vmul.f32 0.007874016, %v609_v62  ;;  %v2496_v62 = vld [vmem:[%s2881_s9 + $0x78] sm:$0xff] }
 0x308   : > { %v1563_v46 = vmax.f32 %v1404_v31, 0.0  ;;  %v1564_v51 = vmax.f32 %v1493_v63, 0.0  ;;  %v1260_v57 = vpack.c.bf16 %v1193_v0, %v1192_v38 }
 0x309   : > { %v1908_v15 = vadd.f32 %v2491_v45, %v1844_v48  ;;  %1420 = vmatmul.bf16.gmra.mxu0 %v1259_v60  ;;  %1509 = vmatmul.bf16.gmra.mxu1 %v1259_v60  ;;  %2471 = vrsqrt.f32 %v642_v14  ;;  %vm1011_vm13 = vcmp.eq.f32.partialorder %v642_v14, inf  ;;  %vm1013_vm14 = vcmp.eq.f32.partialorder %v642_v14, 0.0 }
 0x30a   : > { %v1607_v53 = vpack.c.bf16 %v1563_v46, %v1561_v52  ;;  %v1608_v22 = vpack.c.bf16 %v1564_v51, %v1562_v7  ;;  %v1014_v51 = vand.u32 2147483648, %v642_v14 }
 0x30b   : > { %1940 = vst [vmem:[%s3507_s11 + $0x50] sm:$0xff] %v1908_v15 }
 0x30c   : > { %1773 = vmatmul.bf16.gmra.mxu2 %v1607_v53  ;;  %1862 = vmatmul.bf16.gmra.mxu3 %v1608_v22  ;;  %v1756_v32 = vpop.f32.mrf.mxu2  ;;  %v1845_v34 = vpop.f32.mrf.mxu3 }
 0x30d   : > { %v1406_v36 = vpop.f32.mrf.mxu0  ;;  %v1495_v29 = vpop.f32.mrf.mxu1  ;;  %v1757_v3 = vadd.f32 %v3466_v9, %v1756_v32 }
 0x30e   : > { %v1407_v58 = vadd.f32 %v1406_v36, %v3256_v61  ;;  %v1496_v56 = vadd.f32 %v1495_v29, %v3258_v27 }
 0x30f   : > { %v1846_v24 = vadd.f32 %v1845_v34, %v1757_v3  ;;  %v2472_v47 = vpop.eup %2471 }
 0x310   : > { %v1565_v30 = vmax.f32 %v1407_v58, 0.0  ;;  %v1566_v54 = vmax.f32 %v1496_v56, 0.0  ;;  %v1005_v49 = vmul.f32 %v2472_v47, %v642_v14 }
 0x311   : > { %v1909_v40 = vadd.f32 %v2492_v12, %v1846_v24 }
 0x312   : > { %v1006_v31 = vmul.f32 %v2472_v47, %v1005_v49 }
 0x313   : > { %1941 = vst [vmem:[%s3507_s11 + $0x58] sm:$0xff] %v1909_v40 }
 0x314   : > { %v1759_v8 = vpop.f32.mrf.mxu2  ;;  %v1848_v39 = vpop.f32.mrf.mxu3  ;;  %v1007_v63 = vmul.f32 0.5, %v1006_v31 }
 0x315   : > { %v1408_v50 = vpop.f32.mrf.mxu0  ;;  %v1497_v20 = vpop.f32.mrf.mxu1  ;;  %v1760_v42 = vadd.f32 %v3466_v9, %v1759_v8 }
 0x316   : > { %v1409_v55 = vadd.f32 %v1408_v50, %v3256_v61  ;;  %v1498_v18 = vadd.f32 %v1497_v20, %v3258_v27  ;;  %v1008_v48 = vsub.f32 1.5, %v1007_v63 }
 0x317   : > { %v1849_v26 = vadd.f32 %v1848_v39, %v1760_v42 }
 0x318   : > { %v1567_v17 = vmax.f32 %v1409_v55, 0.0  ;;  %v1568_v37 = vmax.f32 %v1498_v18, 0.0  ;;  %v1009_v52 = vmul.f32 %v2472_v47, %v1008_v48 }
 0x319   : > { %v1910_v4 = vadd.f32 %v2493_v6, %v1849_v26  ;;  %1425 = vmatmul.bf16.gmra.mxu0 %v1260_v57  ;;  %1514 = vmatmul.bf16.gmra.mxu1 %v1260_v57 }
 0x31a   : > { %v1609_v28 = vpack.c.bf16 %v1567_v17, %v1565_v30  ;;  %v1610_v19 = vpack.c.bf16 %v1568_v37, %v1566_v54  ;;  %v1010_v7 = vmul.f32 %v1009_v52, %v642_v14  ;;  %v3703_v52 = vld [vmem:[%s3805_s6] ss:$0 sm:$0xff] }
 0x31b   : > { %1942 = vst [vmem:[%s3507_s11 + $0x60] sm:$0xff] %v1910_v4 }
 0x31c   : > { %1778 = vmatmul.bf16.gmra.mxu2 %v1609_v28  ;;  %1867 = vmatmul.bf16.gmra.mxu3 %v1610_v19  ;;  %v1761_v59 = vpop.f32.mrf.mxu2  ;;  %v1850_v10 = vpop.f32.mrf.mxu3  ;;  %v1012_v15 = vsel %vm1011_vm13, %v642_v14, %v1010_v7  ;;  %v2495_v19 = vld [vmem:[%s2881_s9 + $0x70] sm:$0xff] }
 0x31d   : > { %v1762_v13 = vadd.f32 %v3466_v9, %v1761_v59  ;;  %v1015_v53 = vsel %vm1013_vm14, %v1014_v51, %v1012_v15 }
 0x31e   : > { %v1058_v32 = vadd.f32 1e-06, %v1015_v53 }
 0x31f   : > { %v1851_v25 = vadd.f32 %v1850_v10, %v1762_v13 }
 0x321   : > { %v1911_v43 = vadd.f32 %v2494_v35, %v1851_v25 }
 0x323   : > { %1943 = vst [vmem:[%s3507_s11 + $0x68] sm:$0xff] %v1911_v43 }
 0x348   : > { %v611_v60 = vpop.xlane.xlu0 %610 }
 0x349   : > { %v643_v1 = vmul.f32 0.007874016, %v611_v60 }
 0x34b   : > { %2473 = vrsqrt.f32 %v643_v1  ;;  %vm1023_vm15 = vcmp.eq.f32.partialorder %v643_v1, inf  ;;  %v1026_v29 = vand.u32 2147483648, %v643_v1  ;;  %vm1025_vm0 = vcmp.eq.f32.partialorder %v643_v1, 0.0 }
 0x34c   : > { %2475 = vrcp.f32 %v1058_v32 }
 0x351   : > { %v2474_v46 = vpop.eup %2473 }
 0x352   : > { %v1017_v45 = vmul.f32 %v2474_v46, %v643_v1  ;;  %v2476_v41 = vpop.eup %2475 }
 0x353   : > { %v1123_v16 = vmul.f32 %v2476_v41, %v3492_v23  ;;  %v2499_v41 = vld [vmem:[%s2881_s9 + $0x88] sm:$0xff] }
 0x354   : > { %v1018_v5 = vmul.f32 %v2474_v46, %v1017_v45 }
 0x355   : > { %v1158_v56 = vmul.f32 %v3456_v33, %v1123_v16 }
 0x356   : > { %v1019_v22 = vmul.f32 0.5, %v1018_v5 }
 0x357   : > { %v1194_v26 = vadd.f32 %v3477_v2, %v1158_v56 }
 0x358   : > { %v1020_v21 = vsub.f32 1.5, %v1019_v22 }
 0x35a   : > { %v1021_v34 = vmul.f32 %v2474_v46, %v1020_v21  ;;  %v2498_v21 = vld [vmem:[%s2881_s9 + $0x80] sm:$0xff] }
 0x35c   : > { %v1022_v36 = vmul.f32 %v1021_v34, %v643_v1 }
 0x35e   : > { %v1024_v3 = vsel %vm1023_vm15, %v643_v1, %v1022_v36 }
 0x35f   : > { %v1027_v44 = vsel %vm1025_vm0, %v1026_v29, %v1024_v3 }
 0x360   : > { %v1059_v24 = vadd.f32 1e-06, %v1027_v44 }
 0x362   : > { %2477 = vrcp.f32 %v1059_v24 }
 0x364   : > { %v1411_v12 = vpop.f32.mrf.mxu0  ;;  %v1500_v40 = vpop.f32.mrf.mxu1 }
 0x365   : > { %v1412_v8 = vadd.f32 %v1411_v12, %v3256_v61  ;;  %v1501_v39 = vadd.f32 %v1500_v40, %v3258_v27 }
 0x367   : > { %v1569_v57 = vmax.f32 %v1412_v8, 0.0  ;;  %v1570_v54 = vmax.f32 %v1501_v39, 0.0 }
 0x368   : > { %v2478_v0 = vpop.eup %2477 }
 0x369   : > { %v1124_v58 = vmul.f32 %v2478_v0, %v3555_v11 }
 0x36b   : > { %v1159_v50 = vmul.f32 %v3456_v33, %v1124_v58 }
 0x36c   : > { %v1413_v20 = vpop.f32.mrf.mxu0  ;;  %v1502_v42 = vpop.f32.mrf.mxu1 }
 0x36d   : > { %v1414_v38 = vadd.f32 %v1413_v20, %v3256_v61  ;;  %v1503_v55 = vadd.f32 %v1502_v42, %v3258_v27  ;;  %v1764_v18 = vpop.f32.mrf.mxu2  ;;  %v1853_v23 = vpop.f32.mrf.mxu3  ;;  %v1195_v11 = vadd.f32 %v3477_v2, %v1159_v50 }
 0x36e   : > { %v1765_v30 = vadd.f32 %v3466_v9, %v1764_v18 }
 0x36f   : > { %v1571_v17 = vmax.f32 %v1414_v38, 0.0  ;;  %v1572_v33 = vmax.f32 %v1503_v55, 0.0  ;;  %v1261_v37 = vpack.c.bf16 %v1195_v11, %v1194_v26 }
 0x370   : > { %v1854_v6 = vadd.f32 %v1853_v23, %v1765_v30 }
 0x371   : > { %1430 = vmatmul.bf16.gmra.mxu0 %v1261_v37  ;;  %1519 = vmatmul.bf16.gmra.mxu1 %v1261_v37  ;;  %v1611_v4 = vpack.c.bf16 %v1571_v17, %v1569_v57  ;;  %v1612_v28 = vpack.c.bf16 %v1572_v33, %v1570_v54  ;;  %v2500_v57 = vld [vmem:[%s2881_s9 + $0x90] sm:$0xff] }
 0x372   : > { %v1912_v59 = vadd.f32 %v2495_v19, %v1854_v6 }
 0x373   : > { %1783 = vmatmul.bf16.gmra.mxu2 %v1611_v4  ;;  %1872 = vmatmul.bf16.gmra.mxu3 %v1612_v28  ;;  %v2501_v28 = vld [vmem:[%s2881_s9 + $0x98] sm:$0xff] }
 0x374   : > { %1944 = vst [vmem:[%s3507_s11 + $0x70] sm:$0xff] %v1912_v59 }
 0x375   : > { %v1766_v2 = vpop.f32.mrf.mxu2  ;;  %v1855_v10 = vpop.f32.mrf.mxu3 }
 0x376   : > { %v1767_v13 = vadd.f32 %v3466_v9, %v1766_v2  ;;  %v1416_v25 = vpop.f32.mrf.mxu0  ;;  %v1505_v35 = vpop.f32.mrf.mxu1 }
 0x377   : > { %v1417_v47 = vadd.f32 %v1416_v25, %v3256_v61  ;;  %v1506_v49 = vadd.f32 %v1505_v35, %v3258_v27 }
 0x378   : > { %v1856_v43 = vadd.f32 %v1855_v10, %v1767_v13 }
 0x379   : > { %v1573_v46 = vmax.f32 %v1417_v47, 0.0  ;;  %v1574_v51 = vmax.f32 %v1506_v49, 0.0 }
 0x37a   : > { %v1913_v14 = vadd.f32 %v2496_v62, %v1856_v43 }
 0x37c   : > { %1945 = vst [vmem:[%s3507_s11 + $0x78] sm:$0xff] %v1913_v14 }
 0x37e   : > { %v1418_v31 = vpop.f32.mrf.mxu0  ;;  %v1507_v63 = vpop.f32.mrf.mxu1 }
 0x37f   : > { %v1419_v48 = vadd.f32 %v1418_v31, %v3256_v61  ;;  %v1508_v60 = vadd.f32 %v1507_v63, %v3258_v27  ;;  %v1769_v9 = vpop.f32.mrf.mxu2  ;;  %v1858_v1 = vpop.f32.mrf.mxu3 }
 0x380   : > { %v1770_v7 = vadd.f32 %v3703_v52, %v1769_v9 }
 0x381   : > { %v1575_v45 = vmax.f32 %v1419_v48, 0.0  ;;  %v1576_v15 = vmax.f32 %v1508_v60, 0.0 }
 0x382   : > { %v1859_v5 = vadd.f32 %v1858_v1, %v1770_v7  ;;  %v2502_v1 = vld [vmem:[%s2881_s9 + $0xa0] sm:$0xff] }
 0x383   : > { %v1613_v53 = vpack.c.bf16 %v1575_v45, %v1573_v46  ;;  %v1614_v22 = vpack.c.bf16 %v1576_v15, %v1574_v51 }
 0x384   : > { %v1914_v32 = vadd.f32 %v2498_v21, %v1859_v5  ;;  %v2503_v5 = vld [vmem:[%s2881_s9 + $0xa8] sm:$0xff] }
 0x385   : > { %1788 = vmatmul.bf16.gmra.mxu2 %v1613_v53  ;;  %1877 = vmatmul.bf16.gmra.mxu3 %v1614_v22 }
 0x386   : > { %1946 = vst [vmem:[%s3507_s11 + $0x80] sm:$0xff] %v1914_v32  ;;  %v1421_v34 = vpop.f32.mrf.mxu0  ;;  %v1510_v36 = vpop.f32.mrf.mxu1 }
 0x387   : > { %v1771_v29 = vpop.f32.mrf.mxu2  ;;  %v1860_v3 = vpop.f32.mrf.mxu3  ;;  %v1422_v40 = vadd.f32 %v1421_v34, %v3256_v61  ;;  %v1511_v16 = vadd.f32 %v1510_v36, %v3258_v27 }
 0x388   : > { %v1772_v44 = vadd.f32 %v3703_v52, %v1771_v29 }
 0x389   : > { %v1577_v42 = vmax.f32 %v1422_v40, 0.0  ;;  %v1578_v38 = vmax.f32 %v1511_v16, 0.0 }
 0x38a   : > { %v1861_v24 = vadd.f32 %v1860_v3, %v1772_v44 }
 0x38c   : > { %v1915_v12 = vadd.f32 %v2499_v41, %v1861_v24 }
 0x38e   : > { %1947 = vst [vmem:[%s3507_s11 + $0x88] sm:$0xff] %v1915_v12  ;;  %v1423_v0 = vpop.f32.mrf.mxu0  ;;  %v1512_v58 = vpop.f32.mrf.mxu1 }
 0x38f   : > { %v1424_v56 = vadd.f32 %v1423_v0, %v3256_v61  ;;  %v1513_v8 = vadd.f32 %v1512_v58, %v3258_v27  ;;  %v1774_v39 = vpop.f32.mrf.mxu2  ;;  %v1863_v50 = vpop.f32.mrf.mxu3 }
 0x390   : > { %v1775_v20 = vadd.f32 %v3703_v52, %v1774_v39 }
 0x391   : > { %v1579_v55 = vmax.f32 %v1424_v56, 0.0  ;;  %v1580_v18 = vmax.f32 %v1513_v8, 0.0 }
 0x392   : > { %v1864_v23 = vadd.f32 %v1863_v50, %v1775_v20  ;;  %v2504_v50 = vld [vmem:[%s2881_s9 + $0xb0] sm:$0xff] }
 0x393   : > { %v1615_v26 = vpack.c.bf16 %v1579_v55, %v1577_v42  ;;  %v1616_v11 = vpack.c.bf16 %v1580_v18, %v1578_v38  ;;  %v2505_v55 = vld [vmem:[%s2881_s9 + $0xb8] sm:$0xff] }
 0x394   : > { %v1916_v30 = vadd.f32 %v2500_v57, %v1864_v23 }
 0x395   : > { %1793 = vmatmul.bf16.gmra.mxu2 %v1615_v26  ;;  %1882 = vmatmul.bf16.gmra.mxu3 %v1616_v11 }
 0x396   : > { %1948 = vst [vmem:[%s3507_s11 + $0x90] sm:$0xff] %v1916_v30  ;;  %v1426_v54 = vpop.f32.mrf.mxu0  ;;  %v1515_v17 = vpop.f32.mrf.mxu1  ;;  %v2506_v30 = vld [vmem:[%s2881_s9 + $0xc0] sm:$0xff] }
 0x397   : > { %v1776_v33 = vpop.f32.mrf.mxu2  ;;  %v1865_v37 = vpop.f32.mrf.mxu3  ;;  %v1427_v59 = vadd.f32 %v1426_v54, %v3256_v61  ;;  %v1516_v2 = vadd.f32 %v1515_v17, %v3258_v27 }
 0x398   : > { %v1777_v6 = vadd.f32 %v3703_v52, %v1776_v33 }
 0x399   : > { %v1581_v47 = vmax.f32 %v1427_v59, 0.0  ;;  %v1582_v49 = vmax.f32 %v1516_v2, 0.0 }
 0x39a   : > { %v1866_v4 = vadd.f32 %v1865_v37, %v1777_v6 }
 0x39c   : > { %v1917_v19 = vadd.f32 %v2501_v28, %v1866_v4  ;;  %v2507_v4 = vld [vmem:[%s2881_s9 + $0xc8] sm:$0xff] }
 0x39e   : > { %1949 = vst [vmem:[%s3507_s11 + $0x98] sm:$0xff] %v1917_v19  ;;  %v1428_v13 = vpop.f32.mrf.mxu0  ;;  %v1517_v10 = vpop.f32.mrf.mxu1 }
 0x39f   : > { %v1429_v25 = vadd.f32 %v1428_v13, %v3256_v61  ;;  %v1518_v35 = vadd.f32 %v1517_v10, %v3258_v27  ;;  %v1779_v43 = vpop.f32.mrf.mxu2  ;;  %v1868_v62 = vpop.f32.mrf.mxu3  ;;  %v2508_v10 = vld [vmem:[%s2881_s9 + $0xd0] sm:$0xff] }
 0x3a0   : > { %v1780_v14 = vadd.f32 %v3703_v52, %v1779_v43 }
 0x3a1   : > { %v1583_v31 = vmax.f32 %v1429_v25, 0.0  ;;  %v1584_v63 = vmax.f32 %v1518_v35, 0.0 }
 0x3a2   : > { %v1869_v48 = vadd.f32 %v1868_v62, %v1780_v14 }
 0x3a3   : > { %v1617_v60 = vpack.c.bf16 %v1583_v31, %v1581_v47  ;;  %v1618_v9 = vpack.c.bf16 %v1584_v63, %v1582_v49  ;;  %v2509_v47 = vld [vmem:[%s2881_s9 + $0xd8] sm:$0xff] }
 0x3a4   : > { %v1918_v7 = vadd.f32 %v2502_v1, %v1869_v48 }
 0x3a5   : > { %1798 = vmatmul.bf16.gmra.mxu2 %v1617_v60  ;;  %1887 = vmatmul.bf16.gmra.mxu3 %v1618_v9  ;;  %v2510_v9 = vld [vmem:[%s2881_s9 + $0xe0] sm:$0xff] }
 0x3a6   : > { %1950 = vst [vmem:[%s3507_s11 + $0xa0] sm:$0xff] %v1918_v7 }
 0x3a7   : > { %v1781_v46 = vpop.f32.mrf.mxu2  ;;  %v1870_v45 = vpop.f32.mrf.mxu3 }
 0x3a8   : > { %v1782_v51 = vadd.f32 %v3703_v52, %v1781_v46 }
 0x3aa   : > { %v1871_v15 = vadd.f32 %v1870_v45, %v1782_v51 }
 0x3ac   : > { %v1919_v53 = vadd.f32 %v2503_v5, %v1871_v15  ;;  %v2511_v15 = vld [vmem:[%s2881_s9 + $0xe8] sm:$0xff] }
 0x3ae   : > { %1951 = vst [vmem:[%s3507_s11 + $0xa8] sm:$0xff] %v1919_v53 }
 0x3ee   : > { %v1431_v22 = vpop.f32.mrf.mxu0  ;;  %v1520_v21 = vpop.f32.mrf.mxu1 }
 0x3ef   : > { %v1432_v32 = vadd.f32 %v1431_v22, %v3256_v61  ;;  %v1521_v34 = vadd.f32 %v1520_v21, %v3258_v27 }
 0x3f1   : > { %v1585_v40 = vmax.f32 %v1432_v32, 0.0  ;;  %v1586_v16 = vmax.f32 %v1521_v34, 0.0  ;;  %v2512_v34 = vld [vmem:[%s2881_s9 + $0xf0] sm:$0xff] }
 0x3f6   : > { %v1433_v36 = vpop.f32.mrf.mxu0  ;;  %v1522_v29 = vpop.f32.mrf.mxu1 }
 0x3f7   : > { %v1434_v3 = vadd.f32 %v1433_v36, %v3256_v61  ;;  %v1523_v44 = vadd.f32 %v1522_v29, %v3258_v27  ;;  %v1784_v24 = vpop.f32.mrf.mxu2  ;;  %v1873_v41 = vpop.f32.mrf.mxu3 }
 0x3f8   : > { %v1785_v12 = vadd.f32 %v3703_v52, %v1784_v24 }
 0x3f9   : > { %v1587_v0 = vmax.f32 %v1434_v3, 0.0  ;;  %v1588_v58 = vmax.f32 %v1523_v44, 0.0 }
 0x3fa   : > { %v1874_v56 = vadd.f32 %v1873_v41, %v1785_v12  ;;  %v2513_v41 = vld [vmem:[%s2881_s9 + $0xf8] sm:$0xff] }
 0x3fb   : > { %v1619_v8 = vpack.c.bf16 %v1587_v0, %v1585_v40  ;;  %v1620_v39 = vpack.c.bf16 %v1588_v58, %v1586_v16 }
 0x3fc   : > { %v1920_v20 = vadd.f32 %v2504_v50, %v1874_v56 }
 0x3fd   : > { %1803 = vmatmul.bf16.gmra.mxu2 %v1619_v8  ;;  %1892 = vmatmul.bf16.gmra.mxu3 %v1620_v39 }
 0x3fe   : > { %1952 = vst [vmem:[%s3507_s11 + $0xb0] sm:$0xff] %v1920_v20 }
 0x3ff   : > { %v1786_v61 = vpop.f32.mrf.mxu2  ;;  %v1875_v27 = vpop.f32.mrf.mxu3 }
 0x400   : > { %v1787_v42 = vadd.f32 %v3703_v52, %v1786_v61 }
 0x402   : > { %v1876_v38 = vadd.f32 %v1875_v27, %v1787_v42 }
 0x404   : > { %v1921_v18 = vadd.f32 %v2505_v55, %v1876_v38 }
 0x406   : > { %1953 = vst [vmem:[%s3507_s11 + $0xb8] sm:$0xff] %v1921_v18 }
 0x408   : > { %v1789_v23 = vpop.f32.mrf.mxu2  ;;  %v1878_v26 = vpop.f32.mrf.mxu3 }
 0x409   : > { %v1790_v11 = vadd.f32 %v3703_v52, %v1789_v23 }
 0x40b   : > { %v1879_v57 = vadd.f32 %v1878_v26, %v1790_v11 }
 0x40d   : > { %v1922_v54 = vadd.f32 %v2506_v30, %v1879_v57 }
 0x40f   : > { %1954 = vst [vmem:[%s3507_s11 + $0xc0] sm:$0xff] %v1922_v54 }
 0x410   : > { %v1791_v17 = vpop.f32.mrf.mxu2  ;;  %v1880_v33 = vpop.f32.mrf.mxu3 }
 0x411   : > { %v1792_v37 = vadd.f32 %v3703_v52, %v1791_v17 }
 0x413   : > { %v1881_v6 = vadd.f32 %v1880_v33, %v1792_v37 }
 0x415   : > { %v1923_v28 = vadd.f32 %v2507_v4, %v1881_v6 }
 0x417   : > { %1955 = vst [vmem:[%s3507_s11 + $0xc8] sm:$0xff] %v1923_v28 }
 0x418   : > { %v1794_v19 = vpop.f32.mrf.mxu2  ;;  %v1883_v59 = vpop.f32.mrf.mxu3 }
 0x419   : > { %v1795_v2 = vadd.f32 %v3703_v52, %v1794_v19 }
 0x41b   : > { %v1884_v13 = vadd.f32 %v1883_v59, %v1795_v2 }
 0x41d   : > { %v1924_v25 = vadd.f32 %v2508_v10, %v1884_v13 }
 0x41f   : > { %1956 = vst [vmem:[%s3507_s11 + $0xd0] sm:$0xff] %v1924_v25 }
 0x420   : > { %v1796_v35 = vpop.f32.mrf.mxu2  ;;  %v1885_v43 = vpop.f32.mrf.mxu3 }
 0x421   : > { %v1797_v62 = vadd.f32 %v3703_v52, %v1796_v35 }
 0x423   : > { %v1886_v14 = vadd.f32 %v1885_v43, %v1797_v62 }
 0x425   : > { %v1925_v49 = vadd.f32 %v2509_v47, %v1886_v14 }
 0x427   : > { %1957 = vst [vmem:[%s3507_s11 + $0xd8] sm:$0xff] %v1925_v49 }
 0x428   : > { %v1799_v31 = vpop.f32.mrf.mxu2  ;;  %v1888_v63 = vpop.f32.mrf.mxu3 }
 0x429   : > { %v1800_v48 = vadd.f32 %v3703_v52, %v1799_v31 }
 0x42b   : > { %v1889_v60 = vadd.f32 %v1888_v63, %v1800_v48 }
 0x42d   : > { %v1926_v1 = vadd.f32 %v2510_v9, %v1889_v60 }
 0x42f   : > { %1958 = vst [vmem:[%s3507_s11 + $0xe0] sm:$0xff] %v1926_v1 }
 0x430   : > { %v1801_v7 = vpop.f32.mrf.mxu2  ;;  %v1890_v51 = vpop.f32.mrf.mxu3 }
 0x431   : > { %v1802_v46 = vadd.f32 %v3703_v52, %v1801_v7 }
 0x433   : > { %v1891_v45 = vadd.f32 %v1890_v51, %v1802_v46 }
 0x435   : > { %v1927_v5 = vadd.f32 %v2511_v15, %v1891_v45 }
 0x437   : > { %1959 = vst [vmem:[%s3507_s11 + $0xe8] sm:$0xff] %v1927_v5 }
 0x480   : > { %v1804_v53 = vpop.f32.mrf.mxu2  ;;  %v1893_v22 = vpop.f32.mrf.mxu3 }
 0x481   : > { %v1805_v21 = vadd.f32 %v3703_v52, %v1804_v53 }
 0x483   : > { %v1894_v32 = vadd.f32 %v1893_v22, %v1805_v21 }
 0x485   : > { %v1928_v36 = vadd.f32 %v2512_v34, %v1894_v32 }
 0x487   : > { %1960 = vst [vmem:[%s3507_s11 + $0xf0] sm:$0xff] %v1928_v36 }
 0x488   : > { %v1806_v29 = vpop.f32.mrf.mxu2  ;;  %v1895_v44 = vpop.f32.mrf.mxu3 }
 0x489   : > { %v1807_v3 = vadd.f32 %v3703_v52, %v1806_v29 }
 0x48b   : > { %v1896_v24 = vadd.f32 %v1895_v44, %v1807_v3 }
 0x48d   : > { %v1929_v12 = vadd.f32 %v2513_v41, %v1896_v24 }
 0x48f   : > { %1961 = vst [vmem:[%s3507_s11 + $0xf8] sm:$0xff] %v1929_v12 }
 0x490   : > { %2661 = shalt.err (!%p2658_p11)
}
 0x491   : > { %s2718_s29 = smov 128   ;;  %s2719_s9 = smov 8  }
 0x492   : > { %2276 = dma.vmem_to_hbm [thread:$0]  (%p2845_p3), %s1976_s21, 4096, %s1978_s13, %s1963_s28, %s2718_s29, %s2718_s29, %s2719_s9  }
 0x493 PF: > { %s1992_s11 = sand.u32 1, %s2696_s24   ;;  %p3819_p12 = scmp.ge.s32.totalorder %s2708_s27, 2 }
 0x494   : > { %s1993_s22 = scalar_lea.sflag [#allocation4], %s1992_s11 }
 0x495   : > { %p2293_p13 = pnand %p3819_p12, %p2795_p6 }
 0x497   : > { %p2294_p0 = pneg %p2293_p13 }
 0x499   : > { %2691 = dma.done.wait (%p2294_p0), %s1993_s22, 4096  }
 0x49a   : > { %2693 = vsyncadd (%p2294_p0), %s1993_s22, 4294963200  ;;  %p22_p5 = scmp.ge.s32.totalorder %s2832_s15, 4   ;;  %s3820_s24 = smov %s2700_s25 }
 0x49b   : > { %s3821_s25 = smov %s2704_s26  ;;  %s3822_s26 = smov %s2841_s19 }
 0x49c   : > { %s3823_s27 = smov %s2832_s15  ;;  %24 = sbr.rel (!%p22_p5) target bundleno = 9 (0x9), region = 105 }
 0x4a1   :  { %1999 = vsyncpa [#allocation3], 1 }
 0x4a2   :  { %2001 = vsyncpa [#allocation3 + $0x1], 1 }
 0x4a3   :  { %2002 = vsyncpa [#allocation6], 1 }
 0x4a4   :  { %2003 = vsyncpa [#allocation9], 1 }
 0x4a5   :  { %2004 = vsyncpa [#allocation4], 1 }
 0x4a6   :  { %2006 = vsyncpa [#allocation4 + $0x1], 1 }

</bundles_post_ra>
